<compile_context>
chip_gen: v5e
topology: v5e:2x2
jax: 0.10.0
libtpu: 0.0.40
codegen_flags: <defaults>
</compile_context>

<pallas_src>
import numpy as np
import jax
import jax.numpy as jnp
from jax.experimental import pallas as pl
from jax.experimental.pallas import tpu as pltpu


def round_up(x, m):
    return (x + m - 1) // m * m


def build_interp_matrix(n_in, scale=2):
    """Bilinear interpolation matrix (align_corners=True), shape (n_in*scale, n_in)."""
    n_out = n_in * scale
    A = np.zeros((n_out, n_in), np.float32)
    if n_out == 1 or n_in == 1:
        A[:, 0] = 1.0
        return A
    for o in range(n_out):
        src = o * (n_in - 1) / (n_out - 1)
        i0 = min(int(np.floor(src)), n_in - 1)
        i1 = min(i0 + 1, n_in - 1)
        f = src - i0
        A[o, i0] += 1.0 - f
        A[o, i1] += f
    return A


def build_height_taps(n_in, scale=2):
    """Per-output-row 2-tap (index, weight) tables for bilinear align_corners=True."""
    n_out = n_in * scale
    h0, h1, a0, a1 = [], [], [], []
    for o in range(n_out):
        if n_out == 1 or n_in == 1:
            h0.append(0); h1.append(0); a0.append(1.0); a1.append(0.0)
            continue
        src = o * (n_in - 1) / (n_out - 1)
        i0 = min(int(np.floor(src)), n_in - 1)
        i1 = min(i0 + 1, n_in - 1)
        f = src - i0
        h0.append(i0); h1.append(i1); a0.append(1.0 - f); a1.append(f)
    return h0, h1, a0, a1


def make_kernel(*, H, Wp, Ho, Wo, HWext, eps, upsample, taps):

    def kernel(*refs):
        if upsample:
            x_ref, w_ref, g_ref, gamma_ref, beta_ref, mask_ref, rmat_ref, o_ref = refs
        else:
            x_ref, w_ref, g_ref, gamma_ref, beta_ref, mask_ref, o_ref = refs

        # ---- 3x3 conv (pad=1).  dx taps are pre-packed into lanes on the
        #      host, so only 3 bf16 MXU matmuls remain and every slice starts
        #      at dy*Wp (Wp % 8 == 0 -> sublane aligned).  Clean f32
        #      accumulate chain.
        acc = jnp.dot(x_ref[pl.ds(0, HWext), :], w_ref[0],
                      preferred_element_type=jnp.float32)
        acc = acc + jnp.dot(x_ref[pl.ds(Wp, HWext), :], w_ref[1],
                            preferred_element_type=jnp.float32)
        acc = acc + jnp.dot(x_ref[pl.ds(2 * Wp, HWext), :], w_ref[2],
                            preferred_element_type=jnp.float32)

        # ---- GroupNorm(32): valid-pixel sums on the MXU (one (1, HWext)
        #      indicator row), group averaging via a small block-diag matmul.
        mask = mask_ref[...]                                              # (1, HWext)
        s1 = jnp.dot(mask, acc, preferred_element_type=jnp.float32)       # (1, ct)
        s2 = jnp.dot(mask, acc * acc, preferred_element_type=jnp.float32)  # (1, ct)
        mean = jnp.dot(s1, g_ref[...], preferred_element_type=jnp.float32)
        mean_sq = jnp.dot(s2, g_ref[...], preferred_element_type=jnp.float32)
        var = jnp.maximum(mean_sq - mean * mean, 0.0)   # clamp single-pass variance
        scale = jax.lax.rsqrt(var + eps) * gamma_ref[...]
        shift = beta_ref[...] - mean * scale
        y = jnp.maximum(acc * scale + shift, 0.0)       # GN + ReLU, (HWext, ct) f32

        if upsample:
            # ---- width x2: ONE block-diag kron(I_H, Aw) matmul, bf16 operands,
            #      f32 accumulate; zero columns drop the padded garbage columns.
            rows_all = jnp.dot(rmat_ref[...], y.astype(jnp.bfloat16),
                               preferred_element_type=jnp.float32)   # (H*Wo, ct)
            # ---- height x2 bilinear (align_corners=True): static 2-tap blends.
            h0, h1, a0, a1 = taps
            for u in range(Ho):
                i0, i1, w0, w1 = h0[u], h1[u], a0[u], a1[u]
                r0 = rows_all[i0 * Wo:(i0 + 1) * Wo, :]
                if w1 == 0.0 or i0 == i1:
                    ww = w0 + w1
                    r = r0 if ww == 1.0 else ww * r0
                else:
                    r = w0 * r0 + w1 * rows_all[i1 * Wo:(i1 + 1) * Wo, :]
                o_ref[u, :, :] = r.astype(o_ref.dtype)
        else:
            # ---- no upsample: no matmul needed — store the aligned valid slice
            #      of every image row (h*Wp % 8 == 0).
            for h in range(H):
                o_ref[h, :, :] = y[h * Wp:h * Wp + Wo, :].astype(o_ref.dtype)

    return kernel


def conv3x3_gn_relu(x_nchw, w_oihw, gamma, beta, *, upsample=False,
                    num_groups=32, eps=1e-5):
    N, Cin, H, W = x_nchw.shape
    Cout = w_oihw.shape[0]
    assert Cout % num_groups == 0
    g = Cout // num_groups

    # ---- padded / lane-aligned sizes ---------------------------------------
    Wp = round_up(W + 2, 8)          # padded width -> sublane-aligned row slabs
    Hp = H + 2                       # 1 top + 1 bottom zero row (3 dy taps)
    HWext = H * Wp
    Cin3 = 3 * Cin
    Ck = round_up(Cin3, 128)         # conv K dim (3 dx taps packed into lanes)

    # Channel padding / tile: prefer 256-wide tiles (fills the 256-wide MXU on
    # v6e/v7x); whole GroupNorm groups per tile.  Small Cout falls back to 128,
    # which is already optimal for v5e's 128-wide MXU.
    Cout_p = round_up(Cout, 128)
    if 128 < Cout <= 256:
        Cout_p = 256
    ct = Cout_p
    if Cout_p > 256:
        for cand in (256, 128):
            if Cout_p % cand == 0 and cand % g == 0:
                ct = cand
                break
    n_ct = Cout_p // ct

    # ---- host-side layout plumbing (XLA) -----------------------------------
    # NCHW -> zero-padded NHWC, then pack the 3 dx-shifted copies into lanes:
    #   x_flat[n, y*Wp + x, dx*Cin + ci] = x_pad[n, y, x + dx, ci]
    x = jnp.transpose(x_nchw, (0, 2, 3, 1))                          # NHWC
    x_pad = jnp.pad(x, ((0, 0), (1, Hp - H - 1), (1, Wp - W - 1), (0, 0)))
    shifted = [x_pad]
    for dx in (1, 2):
        shifted.append(jnp.pad(x_pad[:, :, dx:, :], ((0, 0), (0, 0), (0, dx), (0, 0))))
    x_packed = jnp.concatenate(shifted, axis=-1)                     # (N,Hp,Wp,3*Cin)
    x_packed = jnp.pad(x_packed, ((0, 0), (0, 0), (0, 0), (0, Ck - Cin3)))
    x_flat = x_packed.reshape(N, Hp * Wp, Ck).astype(jnp.bfloat16)

    # Weights: (Cout,Cin,3,3) -> (dy, dx*Cin + ci, Cout), matching the packing.
    w_pk = jnp.transpose(w_oihw, (2, 3, 1, 0)).reshape(3, Cin3, Cout)
    w_pk = jnp.pad(w_pk, ((0, 0), (0, Ck - Cin3), (0, Cout_p - Cout))).astype(jnp.bfloat16)

    # Block-diagonal group-average matrix (padded channels never mix with real groups).
    grp = np.arange(Cout_p) // g
    G = jnp.asarray((grp[:, None] == grp[None, :]).astype(np.float32) / (g * H * W))

    gamma2 = jnp.pad(gamma.astype(jnp.float32), (0, Cout_p - Cout)).reshape(1, Cout_p)
    beta2 = jnp.pad(beta.astype(jnp.float32), (0, Cout_p - Cout)).reshape(1, Cout_p)

    # Valid-pixel indicator ROW (1, HWext): GN sums become MXU matmuls.
    mask_row = jnp.asarray(((np.arange(HWext) % Wp) < W)
                           .astype(np.float32)).reshape(1, HWext)

    if upsample:
        Ho, Wo = 2 * H, 2 * W
        Aw = np.zeros((Wo, Wp), np.float32)
        Aw[:, :W] = build_interp_matrix(W)        # width upsample + drop garbage cols
        # Block-diag kron(I_H, Aw): one big matmul instead of H tiny ones.
        # (With the spatial-tiling TODO this matrix becomes per-row-block.)
        rmat = jnp.asarray(np.kron(np.eye(H, dtype=np.float32), Aw),
                           dtype=jnp.bfloat16)
        taps = build_height_taps(H)
    else:
        Ho, Wo = H, W
        rmat = None
        taps = None

    kernel = make_kernel(H=H, Wp=Wp, Ho=Ho, Wo=Wo, HWext=HWext, eps=eps,
                         upsample=upsample, taps=taps)

    in_specs = [
        pl.BlockSpec((None, Hp * Wp, Ck), lambda n, c: (n, 0, 0)),
        pl.BlockSpec((3, Ck, ct), lambda n, c: (0, 0, c)),
        pl.BlockSpec((ct, ct), lambda n, c: (c, c)),
        pl.BlockSpec((1, ct), lambda n, c: (0, c)),
        pl.BlockSpec((1, ct), lambda n, c: (0, c)),
        pl.BlockSpec((1, HWext), lambda n, c: (0, 0)),
    ]
    args = [x_flat, w_pk, G, gamma2, beta2, mask_row]
    if upsample:
        in_specs.append(pl.BlockSpec((H * Wo, HWext), lambda n, c: (0, 0)))
        args.append(rmat)

    # ---- VMEM budget / cost hint --------------------------------------------
    step_bytes = (
        2 * Hp * Wp * Ck * 2                      # x block (double buffered, bf16)
        + 2 * 3 * Ck * ct * 2                     # w block
        + ct * ct * 4 + 4 * ct * 4 + 8 * HWext * 4
        + 2 * Ho * Wo * ct * 2                    # out block (double buffered, bf16)
        + 3 * HWext * ct * 4                      # acc / acc^2 / y intermediates (f32)
    )
    if upsample:
        step_bytes += 2 * H * Wo * HWext * 2 + H * Wo * ct * 4  # rmat + rows_all
    vmem_limit = int(min(64 * 2 ** 20, max(32 * 2 ** 20, int(1.5 * step_bytes))))

    conv_flops = 2 * 9 * Cin * Cout * H * W * N
    gn_flops = 2 * 2 * HWext * Cout_p * N
    resample_flops = 2 * (H * Wo) * HWext * Cout_p * N if upsample else 0
    bytes_accessed = (x_flat.size * 2 + w_pk.size * 2 + G.size * 4
                      + N * Ho * Wo * Cout_p * 2
                      + (rmat.size * 2 if upsample else 0))
    cost = pl.CostEstimate(flops=int(conv_flops + gn_flops + resample_flops),
                           transcendentals=int(N * Cout_p),
                           bytes_accessed=int(bytes_accessed))

    out = pl.pallas_call(
        kernel,
        out_shape=jax.ShapeDtypeStruct((N, Ho, Wo, Cout_p), jnp.bfloat16),
        grid_spec=pltpu.PrefetchScalarGridSpec(
            num_scalar_prefetch=0,
            grid=(N, n_ct),
            in_specs=in_specs,
            out_specs=pl.BlockSpec((None, Ho, Wo, ct), lambda n, c: (n, 0, 0, c)),
        ),
        compiler_params=pltpu.CompilerParams(
            dimension_semantics=("parallel", "parallel"),
            vmem_limit_bytes=vmem_limit),
        cost_estimate=cost,
    )(*args)

    out = out[:, :, :, :Cout]                    # drop channel padding
    # Output stays bf16 (halves HBM writeback + output double-buffering);
    # downstream decoder blocks consume bf16 — cast here if f32 is required.
    return jnp.transpose(out, (0, 3, 1, 2))      # back to NCHW


def ref_forward(x_nchw, w_oihw, gamma, beta, *, upsample=False,
                num_groups=32, eps=1e-5):
    """Pure-JAX f32 reference matching the PyTorch module semantics."""
    y = jax.lax.conv_general_dilated(
        x_nchw.astype(jnp.float32), w_oihw.astype(jnp.float32),
        window_strides=(1, 1), padding=((1, 1), (1, 1)),
        dimension_numbers=("NCHW", "OIHW", "NCHW"))
    N, C, H, W = y.shape
    yg = y.reshape(N, num_groups, -1)
    mean = yg.mean(axis=2, keepdims=True)
    var = yg.var(axis=2, keepdims=True)
    yn = ((yg - mean) * jax.lax.rsqrt(var + eps)).reshape(N, C, H, W)
    y = jnp.maximum(yn * gamma[None, :, None, None] + beta[None, :, None, None], 0.0)
    if upsample:
        Ah = jnp.asarray(build_interp_matrix(H))
        Aw = jnp.asarray(build_interp_matrix(W))
        y = jnp.einsum("oh,nchw->ncow", Ah, y)
        y = jnp.einsum("pw,ncow->ncop", Aw, y)
    return y


if __name__ == "__main__":
    N, Cin, Cout, H, W = 2, 16, 64, 16, 16   # Cout must be divisible by 32 (GroupNorm)
    key = jax.random.PRNGKey(0)
    kx, kw, kg, kb = jax.random.split(key, 4)
    x = jax.random.normal(kx, (N, Cin, H, W), jnp.float32)
    w = jax.random.normal(kw, (Cout, Cin, 3, 3), jnp.float32) * 0.1
    gamma = 1.0 + 0.1 * jax.random.normal(kg, (Cout,), jnp.float32)
    beta = 0.1 * jax.random.normal(kb, (Cout,), jnp.float32)

    for upsample in (False, True):
        out = conv3x3_gn_relu(x, w, gamma, beta, upsample=upsample)
        out = jax.block_until_ready(out)
        ref = ref_forward(x, w, gamma, beta, upsample=upsample)
        assert out.shape == ref.shape, (out.shape, ref.shape)
        err = float(jnp.max(jnp.abs(out.astype(jnp.float32) - ref)))
        # bf16 conv/resample operands and bf16 output -> loose tolerance vs f32 ref.
        assert err < 1e-1, f"max abs err {err} (upsample={upsample})"

    print("KERNEL_OK")
</pallas_src>

<mosaic_0001>
module attributes {stable_mosaic.version = 11 : i64} {
  func.func @kernel(%arg0: i32, %arg1: i32, %arg2: memref<1x432x128xbf16, #tpu.memory_space<vmem>>, %arg3: memref<3x128x128xbf16, #tpu.memory_space<vmem>>, %arg4: memref<128x128xf32, #tpu.memory_space<vmem>>, %arg5: memref<1x128xf32, #tpu.memory_space<vmem>>, %arg6: memref<1x128xf32, #tpu.memory_space<vmem>>, %arg7: memref<1x384xf32, #tpu.memory_space<vmem>>, %arg8: memref<1x16x16x128xbf16, #tpu.memory_space<vmem>>) attributes {dimension_semantics = [#tpu.dimension_semantics<parallel>, #tpu.dimension_semantics<parallel>], iteration_bounds = array<i64: 2, 1>, scalar_prefetch = 0 : i64, scratch_operands = 0 : i64, tpu.core_type = #tpu.core_type<tc>, window_params = [{transform_indices = @transform_0, window_bounds = array<i64: 1, 432, 128>}, {transform_indices = @transform_1, window_bounds = array<i64: 3, 128, 128>}, {transform_indices = @transform_2, window_bounds = array<i64: 128, 128>}, {transform_indices = @transform_3, window_bounds = array<i64: 1, 128>}, {transform_indices = @transform_4, window_bounds = array<i64: 1, 128>}, {pipeline_mode = #tpu.pipeline_mode<synchronous>, transform_indices = @transform_5, window_bounds = array<i64: 1, 384>}, {transform_indices = @transform_6, window_bounds = array<i64: 1, 16, 16, 128>}]} {
    %c0 = arith.constant 0 : index
    %c0_0 = arith.constant 0 : index
    %c0_1 = arith.constant 0 : index
    %0 = vector.load %arg2[%c0, %c0_0, %c0_1] : memref<1x432x128xbf16, #tpu.memory_space<vmem>>, vector<1x384x128xbf16>
    %1 = vector.shape_cast %0 : vector<1x384x128xbf16> to vector<384x128xbf16>
    %c0_2 = arith.constant 0 : index
    %c0_3 = arith.constant 0 : index
    %c0_4 = arith.constant 0 : index
    %2 = vector.load %arg3[%c0_2, %c0_3, %c0_4] : memref<3x128x128xbf16, #tpu.memory_space<vmem>>, vector<1x128x128xbf16>
    %3 = vector.shape_cast %2 : vector<1x128x128xbf16> to vector<128x128xbf16>
    %cst = arith.constant dense<0.000000e+00> : vector<384x128xf32>
    %4 = tpu.matmul %1, %3, %cst {dimension_numbers = #tpu.dot_dimension_numbers<[1], [0], [0], [1], [0, 0, 1, 1], [], []>} : vector<384x128xbf16>, vector<128x128xbf16>, vector<384x128xf32> -> vector<384x128xf32>
    %c0_5 = arith.constant 0 : index
    %c24 = arith.constant 24 : index
    %c0_6 = arith.constant 0 : index
    %5 = vector.load %arg2[%c0_5, %c24, %c0_6] : memref<1x432x128xbf16, #tpu.memory_space<vmem>>, vector<1x384x128xbf16>
    %6 = vector.shape_cast %5 : vector<1x384x128xbf16> to vector<384x128xbf16>
    %c1 = arith.constant 1 : index
    %c0_7 = arith.constant 0 : index
    %c0_8 = arith.constant 0 : index
    %7 = vector.load %arg3[%c1, %c0_7, %c0_8] : memref<3x128x128xbf16, #tpu.memory_space<vmem>>, vector<1x128x128xbf16>
    %8 = vector.shape_cast %7 : vector<1x128x128xbf16> to vector<128x128xbf16>
    %cst_9 = arith.constant dense<0.000000e+00> : vector<384x128xf32>
    %9 = tpu.matmul %6, %8, %cst_9 {dimension_numbers = #tpu.dot_dimension_numbers<[1], [0], [0], [1], [0, 0, 1, 1], [], []>} : vector<384x128xbf16>, vector<128x128xbf16>, vector<384x128xf32> -> vector<384x128xf32>
    %10 = arith.addf %4, %9 : vector<384x128xf32>
    %c0_10 = arith.constant 0 : index
    %c48 = arith.constant 48 : index
    %c0_11 = arith.constant 0 : index
    %11 = vector.load %arg2[%c0_10, %c48, %c0_11] : memref<1x432x128xbf16, #tpu.memory_space<vmem>>, vector<1x384x128xbf16>
    %12 = vector.shape_cast %11 : vector<1x384x128xbf16> to vector<384x128xbf16>
    %c2 = arith.constant 2 : index
    %c0_12 = arith.constant 0 : index
    %c0_13 = arith.constant 0 : index
    %13 = vector.load %arg3[%c2, %c0_12, %c0_13] : memref<3x128x128xbf16, #tpu.memory_space<vmem>>, vector<1x128x128xbf16>
    %14 = vector.shape_cast %13 : vector<1x128x128xbf16> to vector<128x128xbf16>
    %cst_14 = arith.constant dense<0.000000e+00> : vector<384x128xf32>
    %15 = tpu.matmul %12, %14, %cst_14 {dimension_numbers = #tpu.dot_dimension_numbers<[1], [0], [0], [1], [0, 0, 1, 1], [], []>} : vector<384x128xbf16>, vector<128x128xbf16>, vector<384x128xf32> -> vector<384x128xf32>
    %16 = arith.addf %10, %15 : vector<384x128xf32>
    %c0_15 = arith.constant 0 : index
    %c0_16 = arith.constant 0 : index
    %17 = vector.load %arg7[%c0_15, %c0_16] : memref<1x384xf32, #tpu.memory_space<vmem>>, vector<1x384xf32>
    %cst_17 = arith.constant dense<0.000000e+00> : vector<1x128xf32>
    %18 = tpu.matmul %17, %16, %cst_17 {dimension_numbers = #tpu.dot_dimension_numbers<[1], [0], [0], [1], [0, 0, 1, 1], [], []>} : vector<1x384xf32>, vector<384x128xf32>, vector<1x128xf32> -> vector<1x128xf32>
    %19 = arith.mulf %16, %16 : vector<384x128xf32>
    %cst_18 = arith.constant dense<0.000000e+00> : vector<1x128xf32>
    %20 = tpu.matmul %17, %19, %cst_18 {dimension_numbers = #tpu.dot_dimension_numbers<[1], [0], [0], [1], [0, 0, 1, 1], [], []>} : vector<1x384xf32>, vector<384x128xf32>, vector<1x128xf32> -> vector<1x128xf32>
    %c0_19 = arith.constant 0 : index
    %c0_20 = arith.constant 0 : index
    %21 = vector.load %arg4[%c0_19, %c0_20] : memref<128x128xf32, #tpu.memory_space<vmem>>, vector<128x128xf32>
    %cst_21 = arith.constant dense<0.000000e+00> : vector<1x128xf32>
    %22 = tpu.matmul %18, %21, %cst_21 {dimension_numbers = #tpu.dot_dimension_numbers<[1], [0], [0], [1], [0, 0, 1, 1], [], []>} : vector<1x128xf32>, vector<128x128xf32>, vector<1x128xf32> -> vector<1x128xf32>
    %c0_22 = arith.constant 0 : index
    %c0_23 = arith.constant 0 : index
    %23 = vector.load %arg4[%c0_22, %c0_23] : memref<128x128xf32, #tpu.memory_space<vmem>>, vector<128x128xf32>
    %cst_24 = arith.constant dense<0.000000e+00> : vector<1x128xf32>
    %24 = tpu.matmul %20, %23, %cst_24 {dimension_numbers = #tpu.dot_dimension_numbers<[1], [0], [0], [1], [0, 0, 1, 1], [], []>} : vector<1x128xf32>, vector<128x128xf32>, vector<1x128xf32> -> vector<1x128xf32>
    %25 = arith.mulf %22, %22 : vector<1x128xf32>
    %26 = arith.subf %24, %25 : vector<1x128xf32>
    %cst_25 = arith.constant 0.000000e+00 : f32
    %27 = vector.broadcast %cst_25 : f32 to vector<1x128xf32>
    %28 = arith.maximumf %26, %27 : vector<1x128xf32>
    %cst_26 = arith.constant 9.99999974E-6 : f32
    %29 = vector.broadcast %cst_26 : f32 to vector<1x128xf32>
    %30 = arith.addf %28, %29 : vector<1x128xf32>
    %31 = math.rsqrt %30 : vector<1x128xf32>
    %c0_27 = arith.constant 0 : index
    %c0_28 = arith.constant 0 : index
    %32 = vector.load %arg5[%c0_27, %c0_28] : memref<1x128xf32, #tpu.memory_space<vmem>>, vector<1x128xf32>
    %33 = arith.mulf %31, %32 : vector<1x128xf32>
    %c0_29 = arith.constant 0 : index
    %c0_30 = arith.constant 0 : index
    %34 = vector.load %arg6[%c0_29, %c0_30] : memref<1x128xf32, #tpu.memory_space<vmem>>, vector<1x128xf32>
    %35 = arith.mulf %22, %33 : vector<1x128xf32>
    %36 = arith.subf %34, %35 : vector<1x128xf32>
    %37 = vector.broadcast %33 : vector<1x128xf32> to vector<384x128xf32>
    %38 = arith.mulf %16, %37 : vector<384x128xf32>
    %39 = vector.broadcast %36 : vector<1x128xf32> to vector<384x128xf32>
    %40 = arith.addf %38, %39 : vector<384x128xf32>
    %cst_31 = arith.constant 0.000000e+00 : f32
    %41 = vector.broadcast %cst_31 : f32 to vector<384x128xf32>
    %42 = arith.maximumf %40, %41 : vector<384x128xf32>
    %43 = vector.extract_strided_slice %42 {offsets = [0, 0], sizes = [16, 128], strides = [1, 1]} : vector<384x128xf32> to vector<16x128xf32>
    %44 = arith.truncf %43 : vector<16x128xf32> to vector<16x128xbf16>
    %c0_32 = arith.constant 0 : index
    %c0_33 = arith.constant 0 : index
    %c0_34 = arith.constant 0 : index
    %c0_35 = arith.constant 0 : index
    %45 = vector.load %arg8[%c0_32, %c0_33, %c0_34, %c0_35] : memref<1x16x16x128xbf16, #tpu.memory_space<vmem>>, vector<1x1x16x128xbf16>
    %46 = vector.shape_cast %45 : vector<1x1x16x128xbf16> to vector<16x128xbf16>
    %47 = vector.shape_cast %44 : vector<16x128xbf16> to vector<1x1x16x128xbf16>
    tpu.vector_store %arg8[%c0_32, %c0_33, %c0_34, %c0_35], %47 {strides = array<i32>} : memref<1x16x16x128xbf16, #tpu.memory_space<vmem>>, vector<1x1x16x128xbf16>,
    %48 = vector.extract_strided_slice %42 {offsets = [24, 0], sizes = [16, 128], strides = [1, 1]} : vector<384x128xf32> to vector<16x128xf32>
    %49 = arith.truncf %48 : vector<16x128xf32> to vector<16x128xbf16>
    %c0_36 = arith.constant 0 : index
    %c1_37 = arith.constant 1 : index
    %c0_38 = arith.constant 0 : index
    %c0_39 = arith.constant 0 : index
    %50 = vector.load %arg8[%c0_36, %c1_37, %c0_38, %c0_39] : memref<1x16x16x128xbf16, #tpu.memory_space<vmem>>, vector<1x1x16x128xbf16>
    %51 = vector.shape_cast %50 : vector<1x1x16x128xbf16> to vector<16x128xbf16>
    %52 = vector.shape_cast %49 : vector<16x128xbf16> to vector<1x1x16x128xbf16>
    tpu.vector_store %arg8[%c0_36, %c1_37, %c0_38, %c0_39], %52 {strides = array<i32>} : memref<1x16x16x128xbf16, #tpu.memory_space<vmem>>, vector<1x1x16x128xbf16>,
    %53 = vector.extract_strided_slice %42 {offsets = [48, 0], sizes = [16, 128], strides = [1, 1]} : vector<384x128xf32> to vector<16x128xf32>
    %54 = arith.truncf %53 : vector<16x128xf32> to vector<16x128xbf16>
    %c0_40 = arith.constant 0 : index
    %c2_41 = arith.constant 2 : index
    %c0_42 = arith.constant 0 : index
    %c0_43 = arith.constant 0 : index
    %55 = vector.load %arg8[%c0_40, %c2_41, %c0_42, %c0_43] : memref<1x16x16x128xbf16, #tpu.memory_space<vmem>>, vector<1x1x16x128xbf16>
    %56 = vector.shape_cast %55 : vector<1x1x16x128xbf16> to vector<16x128xbf16>
    %57 = vector.shape_cast %54 : vector<16x128xbf16> to vector<1x1x16x128xbf16>
    tpu.vector_store %arg8[%c0_40, %c2_41, %c0_42, %c0_43], %57 {strides = array<i32>} : memref<1x16x16x128xbf16, #tpu.memory_space<vmem>>, vector<1x1x16x128xbf16>,
    %58 = vector.extract_strided_slice %42 {offsets = [72, 0], sizes = [16, 128], strides = [1, 1]} : vector<384x128xf32> to vector<16x128xf32>
    %59 = arith.truncf %58 : vector<16x128xf32> to vector<16x128xbf16>
    %c0_44 = arith.constant 0 : index
    %c3 = arith.constant 3 : index
    %c0_45 = arith.constant 0 : index
    %c0_46 = arith.constant 0 : index
    %60 = vector.load %arg8[%c0_44, %c3, %c0_45, %c0_46] : memref<1x16x16x128xbf16, #tpu.memory_space<vmem>>, vector<1x1x16x128xbf16>
    %61 = vector.shape_cast %60 : vector<1x1x16x128xbf16> to vector<16x128xbf16>
    %62 = vector.shape_cast %59 : vector<16x128xbf16> to vector<1x1x16x128xbf16>
    tpu.vector_store %arg8[%c0_44, %c3, %c0_45, %c0_46], %62 {strides = array<i32>} : memref<1x16x16x128xbf16, #tpu.memory_space<vmem>>, vector<1x1x16x128xbf16>,
    %63 = vector.extract_strided_slice %42 {offsets = [96, 0], sizes = [16, 128], strides = [1, 1]} : vector<384x128xf32> to vector<16x128xf32>
    %64 = arith.truncf %63 : vector<16x128xf32> to vector<16x128xbf16>
    %c0_47 = arith.constant 0 : index
    %c4 = arith.constant 4 : index
    %c0_48 = arith.constant 0 : index
    %c0_49 = arith.constant 0 : index
    %65 = vector.load %arg8[%c0_47, %c4, %c0_48, %c0_49] : memref<1x16x16x128xbf16, #tpu.memory_space<vmem>>, vector<1x1x16x128xbf16>
    %66 = vector.shape_cast %65 : vector<1x1x16x128xbf16> to vector<16x128xbf16>
    %67 = vector.shape_cast %64 : vector<16x128xbf16> to vector<1x1x16x128xbf16>
    tpu.vector_store %arg8[%c0_47, %c4, %c0_48, %c0_49], %67 {strides = array<i32>} : memref<1x16x16x128xbf16, #tpu.memory_space<vmem>>, vector<1x1x16x128xbf16>,
    %68 = vector.extract_strided_slice %42 {offsets = [120, 0], sizes = [16, 128], strides = [1, 1]} : vector<384x128xf32> to vector<16x128xf32>
    %69 = arith.truncf %68 : vector<16x128xf32> to vector<16x128xbf16>
    %c0_50 = arith.constant 0 : index
    %c5 = arith.constant 5 : index
    %c0_51 = arith.constant 0 : index
    %c0_52 = arith.constant 0 : index
    %70 = vector.load %arg8[%c0_50, %c5, %c0_51, %c0_52] : memref<1x16x16x128xbf16, #tpu.memory_space<vmem>>, vector<1x1x16x128xbf16>
    %71 = vector.shape_cast %70 : vector<1x1x16x128xbf16> to vector<16x128xbf16>
    %72 = vector.shape_cast %69 : vector<16x128xbf16> to vector<1x1x16x128xbf16>
    tpu.vector_store %arg8[%c0_50, %c5, %c0_51, %c0_52], %72 {strides = array<i32>} : memref<1x16x16x128xbf16, #tpu.memory_space<vmem>>, vector<1x1x16x128xbf16>,
    %73 = vector.extract_strided_slice %42 {offsets = [144, 0], sizes = [16, 128], strides = [1, 1]} : vector<384x128xf32> to vector<16x128xf32>
    %74 = arith.truncf %73 : vector<16x128xf32> to vector<16x128xbf16>
    %c0_53 = arith.constant 0 : index
    %c6 = arith.constant 6 : index
    %c0_54 = arith.constant 0 : index
    %c0_55 = arith.constant 0 : index
    %75 = vector.load %arg8[%c0_53, %c6, %c0_54, %c0_55] : memref<1x16x16x128xbf16, #tpu.memory_space<vmem>>, vector<1x1x16x128xbf16>
    %76 = vector.shape_cast %75 : vector<1x1x16x128xbf16> to vector<16x128xbf16>
    %77 = vector.shape_cast %74 : vector<16x128xbf16> to vector<1x1x16x128xbf16>
    tpu.vector_store %arg8[%c0_53, %c6, %c0_54, %c0_55], %77 {strides = array<i32>} : memref<1x16x16x128xbf16, #tpu.memory_space<vmem>>, vector<1x1x16x128xbf16>,
    %78 = vector.extract_strided_slice %42 {offsets = [168, 0], sizes = [16, 128], strides = [1, 1]} : vector<384x128xf32> to vector<16x128xf32>
    %79 = arith.truncf %78 : vector<16x128xf32> to vector<16x128xbf16>
    %c0_56 = arith.constant 0 : index
    %c7 = arith.constant 7 : index
    %c0_57 = arith.constant 0 : index
    %c0_58 = arith.constant 0 : index
    %80 = vector.load %arg8[%c0_56, %c7, %c0_57, %c0_58] : memref<1x16x16x128xbf16, #tpu.memory_space<vmem>>, vector<1x1x16x128xbf16>
    %81 = vector.shape_cast %80 : vector<1x1x16x128xbf16> to vector<16x128xbf16>
    %82 = vector.shape_cast %79 : vector<16x128xbf16> to vector<1x1x16x128xbf16>
    tpu.vector_store %arg8[%c0_56, %c7, %c0_57, %c0_58], %82 {strides = array<i32>} : memref<1x16x16x128xbf16, #tpu.memory_space<vmem>>, vector<1x1x16x128xbf16>,
    %83 = vector.extract_strided_slice %42 {offsets = [192, 0], sizes = [16, 128], strides = [1, 1]} : vector<384x128xf32> to vector<16x128xf32>
    %84 = arith.truncf %83 : vector<16x128xf32> to vector<16x128xbf16>
    %c0_59 = arith.constant 0 : index
    %c8 = arith.constant 8 : index
    %c0_60 = arith.constant 0 : index
    %c0_61 = arith.constant 0 : index
    %85 = vector.load %arg8[%c0_59, %c8, %c0_60, %c0_61] : memref<1x16x16x128xbf16, #tpu.memory_space<vmem>>, vector<1x1x16x128xbf16>
    %86 = vector.shape_cast %85 : vector<1x1x16x128xbf16> to vector<16x128xbf16>
    %87 = vector.shape_cast %84 : vector<16x128xbf16> to vector<1x1x16x128xbf16>
    tpu.vector_store %arg8[%c0_59, %c8, %c0_60, %c0_61], %87 {strides = array<i32>} : memref<1x16x16x128xbf16, #tpu.memory_space<vmem>>, vector<1x1x16x128xbf16>,
    %88 = vector.extract_strided_slice %42 {offsets = [216, 0], sizes = [16, 128], strides = [1, 1]} : vector<384x128xf32> to vector<16x128xf32>
    %89 = arith.truncf %88 : vector<16x128xf32> to vector<16x128xbf16>
    %c0_62 = arith.constant 0 : index
    %c9 = arith.constant 9 : index
    %c0_63 = arith.constant 0 : index
    %c0_64 = arith.constant 0 : index
    %90 = vector.load %arg8[%c0_62, %c9, %c0_63, %c0_64] : memref<1x16x16x128xbf16, #tpu.memory_space<vmem>>, vector<1x1x16x128xbf16>
    %91 = vector.shape_cast %90 : vector<1x1x16x128xbf16> to vector<16x128xbf16>
    %92 = vector.shape_cast %89 : vector<16x128xbf16> to vector<1x1x16x128xbf16>
    tpu.vector_store %arg8[%c0_62, %c9, %c0_63, %c0_64], %92 {strides = array<i32>} : memref<1x16x16x128xbf16, #tpu.memory_space<vmem>>, vector<1x1x16x128xbf16>,
    %93 = vector.extract_strided_slice %42 {offsets = [240, 0], sizes = [16, 128], strides = [1, 1]} : vector<384x128xf32> to vector<16x128xf32>
    %94 = arith.truncf %93 : vector<16x128xf32> to vector<16x128xbf16>
    %c0_65 = arith.constant 0 : index
    %c10 = arith.constant 10 : index
    %c0_66 = arith.constant 0 : index
    %c0_67 = arith.constant 0 : index
    %95 = vector.load %arg8[%c0_65, %c10, %c0_66, %c0_67] : memref<1x16x16x128xbf16, #tpu.memory_space<vmem>>, vector<1x1x16x128xbf16>
    %96 = vector.shape_cast %95 : vector<1x1x16x128xbf16> to vector<16x128xbf16>
    %97 = vector.shape_cast %94 : vector<16x128xbf16> to vector<1x1x16x128xbf16>
    tpu.vector_store %arg8[%c0_65, %c10, %c0_66, %c0_67], %97 {strides = array<i32>} : memref<1x16x16x128xbf16, #tpu.memory_space<vmem>>, vector<1x1x16x128xbf16>,
    %98 = vector.extract_strided_slice %42 {offsets = [264, 0], sizes = [16, 128], strides = [1, 1]} : vector<384x128xf32> to vector<16x128xf32>
    %99 = arith.truncf %98 : vector<16x128xf32> to vector<16x128xbf16>
    %c0_68 = arith.constant 0 : index
    %c11 = arith.constant 11 : index
    %c0_69 = arith.constant 0 : index
    %c0_70 = arith.constant 0 : index
    %100 = vector.load %arg8[%c0_68, %c11, %c0_69, %c0_70] : memref<1x16x16x128xbf16, #tpu.memory_space<vmem>>, vector<1x1x16x128xbf16>
    %101 = vector.shape_cast %100 : vector<1x1x16x128xbf16> to vector<16x128xbf16>
    %102 = vector.shape_cast %99 : vector<16x128xbf16> to vector<1x1x16x128xbf16>
    tpu.vector_store %arg8[%c0_68, %c11, %c0_69, %c0_70], %102 {strides = array<i32>} : memref<1x16x16x128xbf16, #tpu.memory_space<vmem>>, vector<1x1x16x128xbf16>,
    %103 = vector.extract_strided_slice %42 {offsets = [288, 0], sizes = [16, 128], strides = [1, 1]} : vector<384x128xf32> to vector<16x128xf32>
    %104 = arith.truncf %103 : vector<16x128xf32> to vector<16x128xbf16>
    %c0_71 = arith.constant 0 : index
    %c12 = arith.constant 12 : index
    %c0_72 = arith.constant 0 : index
    %c0_73 = arith.constant 0 : index
    %105 = vector.load %arg8[%c0_71, %c12, %c0_72, %c0_73] : memref<1x16x16x128xbf16, #tpu.memory_space<vmem>>, vector<1x1x16x128xbf16>
    %106 = vector.shape_cast %105 : vector<1x1x16x128xbf16> to vector<16x128xbf16>
    %107 = vector.shape_cast %104 : vector<16x128xbf16> to vector<1x1x16x128xbf16>
    tpu.vector_store %arg8[%c0_71, %c12, %c0_72, %c0_73], %107 {strides = array<i32>} : memref<1x16x16x128xbf16, #tpu.memory_space<vmem>>, vector<1x1x16x128xbf16>,
    %108 = vector.extract_strided_slice %42 {offsets = [312, 0], sizes = [16, 128], strides = [1, 1]} : vector<384x128xf32> to vector<16x128xf32>
    %109 = arith.truncf %108 : vector<16x128xf32> to vector<16x128xbf16>
    %c0_74 = arith.constant 0 : index
    %c13 = arith.constant 13 : index
    %c0_75 = arith.constant 0 : index
    %c0_76 = arith.constant 0 : index
    %110 = vector.load %arg8[%c0_74, %c13, %c0_75, %c0_76] : memref<1x16x16x128xbf16, #tpu.memory_space<vmem>>, vector<1x1x16x128xbf16>
    %111 = vector.shape_cast %110 : vector<1x1x16x128xbf16> to vector<16x128xbf16>
    %112 = vector.shape_cast %109 : vector<16x128xbf16> to vector<1x1x16x128xbf16>
    tpu.vector_store %arg8[%c0_74, %c13, %c0_75, %c0_76], %112 {strides = array<i32>} : memref<1x16x16x128xbf16, #tpu.memory_space<vmem>>, vector<1x1x16x128xbf16>,
    %113 = vector.extract_strided_slice %42 {offsets = [336, 0], sizes = [16, 128], strides = [1, 1]} : vector<384x128xf32> to vector<16x128xf32>
    %114 = arith.truncf %113 : vector<16x128xf32> to vector<16x128xbf16>
    %c0_77 = arith.constant 0 : index
    %c14 = arith.constant 14 : index
    %c0_78 = arith.constant 0 : index
    %c0_79 = arith.constant 0 : index
    %115 = vector.load %arg8[%c0_77, %c14, %c0_78, %c0_79] : memref<1x16x16x128xbf16, #tpu.memory_space<vmem>>, vector<1x1x16x128xbf16>
    %116 = vector.shape_cast %115 : vector<1x1x16x128xbf16> to vector<16x128xbf16>
    %117 = vector.shape_cast %114 : vector<16x128xbf16> to vector<1x1x16x128xbf16>
    tpu.vector_store %arg8[%c0_77, %c14, %c0_78, %c0_79], %117 {strides = array<i32>} : memref<1x16x16x128xbf16, #tpu.memory_space<vmem>>, vector<1x1x16x128xbf16>,
    %118 = vector.extract_strided_slice %42 {offsets = [360, 0], sizes = [16, 128], strides = [1, 1]} : vector<384x128xf32> to vector<16x128xf32>
    %119 = arith.truncf %118 : vector<16x128xf32> to vector<16x128xbf16>
    %c0_80 = arith.constant 0 : index
    %c15 = arith.constant 15 : index
    %c0_81 = arith.constant 0 : index
    %c0_82 = arith.constant 0 : index
    %120 = vector.load %arg8[%c0_80, %c15, %c0_81, %c0_82] : memref<1x16x16x128xbf16, #tpu.memory_space<vmem>>, vector<1x1x16x128xbf16>
    %121 = vector.shape_cast %120 : vector<1x1x16x128xbf16> to vector<16x128xbf16>
    %122 = vector.shape_cast %119 : vector<16x128xbf16> to vector<1x1x16x128xbf16>
    tpu.vector_store %arg8[%c0_80, %c15, %c0_81, %c0_82], %122 {strides = array<i32>} : memref<1x16x16x128xbf16, #tpu.memory_space<vmem>>, vector<1x1x16x128xbf16>,
    return
  }
  func.func @transform_0(%arg0: i32, %arg1: i32) -> (i32, i32, i32) {
    %c0_i32 = arith.constant 0 : i32
    %c0_i32_0 = arith.constant 0 : i32
    %c0_i32_1 = arith.constant 0 : i32
    return %arg0, %c0_i32, %c0_i32_0 : i32, i32, i32
  }
  func.func @transform_1(%arg0: i32, %arg1: i32) -> (i32, i32, i32) {
    %c0_i32 = arith.constant 0 : i32
    %c0_i32_0 = arith.constant 0 : i32
    %c0_i32_1 = arith.constant 0 : i32
    return %c0_i32, %c0_i32_0, %arg1 : i32, i32, i32
  }
  func.func @transform_2(%arg0: i32, %arg1: i32) -> (i32, i32) {
    %c0_i32 = arith.constant 0 : i32
    return %arg1, %arg1 : i32, i32
  }
  func.func @transform_3(%arg0: i32, %arg1: i32) -> (i32, i32) {
    %c0_i32 = arith.constant 0 : i32
    %c0_i32_0 = arith.constant 0 : i32
    return %c0_i32, %arg1 : i32, i32
  }
  func.func @transform_4(%arg0: i32, %arg1: i32) -> (i32, i32) {
    %c0_i32 = arith.constant 0 : i32
    %c0_i32_0 = arith.constant 0 : i32
    return %c0_i32, %arg1 : i32, i32
  }
  func.func @transform_5(%arg0: i32, %arg1: i32) -> (i32, i32) {
    %c0_i32 = arith.constant 0 : i32
    %c0_i32_0 = arith.constant 0 : i32
    %c0_i32_1 = arith.constant 0 : i32
    return %c0_i32, %c0_i32_0 : i32, i32
  }
  func.func @transform_6(%arg0: i32, %arg1: i32) -> (i32, i32, i32, i32) {
    %c0_i32 = arith.constant 0 : i32
    %c0_i32_0 = arith.constant 0 : i32
    %c0_i32_1 = arith.constant 0 : i32
    return %arg0, %c0_i32, %c0_i32_0, %arg1 : i32, i32, i32, i32
  }
}

</mosaic_0001>

<bundles_post_ra>
// kernel: tpu_custom_call.1
= control target key start
LH: loop header
LB: loop body
LE: loop exit
PB: predicated region body
PF: predicated region fallthrough
CT: control target
= control target key end

     0   :  { %s3745_s0 = inlined_call_operand.hbm [shape: bf16[2,432,128], index: 0, kind: input, shape index: {}]   ;;  %s3746_s1 = inlined_call_operand.hbm [shape: bf16[3,128,128], index: 1, kind: input, shape index: {}]   ;;  %s3747_s2 = inlined_call_operand.hbm [shape: f32[128,128], index: 2, kind: input, shape index: {}]   ;;  %s3748_s3 = inlined_call_operand.vmem [shape: f32[1,128], index: 3, kind: input, shape index: {}]   ;;  %s3749_s4 = inlined_call_operand.hbm [shape: f32[1,128], index: 4, kind: input, shape index: {}]   ;;  %s3750_s5 = inlined_call_operand.vmem [shape: f32[1,384], index: 5, kind: input, shape index: {}]   ;;  %s3751_s6 = inlined_call_operand.hbm [shape: bf16[2,16,16,128], index: 6, kind: output, shape index: {}]  }
   0x1   :  { %3770 = sst [smem:[#allocation24_spill]] %s3746_s1 }
   0x2   :  { %3771 = sst [smem:[#allocation25_spill]] %s3747_s2 }
   0x3   :  { %3772 = sst [smem:[#allocation26_spill]] %s3749_s4 }
   0x4   :  { %11 = vsyncpa [#allocation3], 0 }
   0x5   :  { %13 = vsyncpa [#allocation3 + $0x1], 0 }
   0x6   :  { %14 = vsyncpa [#allocation6], 0 }
   0x7   :  { %15 = vsyncpa [#allocation9], 0 }
   0x8   :  { %16 = vsyncpa [#allocation4], 0 }
   0x9   :  { %18 = vsyncpa [#allocation4 + $0x1], 0  ;;  %s3076_s21 = smov 0   ;;  %s3078_s22 = smov 0  }
   0xa   :  { %s3080_s23 = smov 0   ;;  %s3082_s24 = smov 0  }
   0xb   :  { %s3084_s25 = smov 0   ;;  %s3086_s26 = smov 0  }
   0xc LB: > { %s2021_s27 = sadd.s32 4294967295, %s3030_s26   ;;  %s2022_s28 = sadd.s32 4294967294, %s3030_s26   ;;  %s3030_s26 = sphi %s3086_s26, %s24_s26   ;;  %s3026_s25 = sphi %s3084_s25, %s3808_s25   ;;  %s3022_s24 = sphi %s3082_s24, %s3807_s24   ;;  %s3018_s23 = sphi %s3080_s23, %s3806_s23   ;;  %s3014_s22 = sphi %s3078_s22, %s3805_s22   ;;  %s3010_s21 = sphi %s3076_s21, %s3804_s21  }
   0xd   : > { %p56_p0 = scmp.ne.s32.totalorder %s3014_s22, %s3010_s21  ;;  %p3110_p1 = scmp.eq.s32.totalorder %s2021_s27, 0 }
   0xe   : > { %p3114_p2 = scmp.eq.s32.totalorder %s2021_s27, 1  ;;  %p215_p3 = scmp.eq.s32.totalorder %s2022_s28, 1 }
   0xf   : > { %p3120_p4 = por %p3110_p1, %p56_p0  ;;  %p2023_p5 = scmp.ge.s32.totalorder %s3030_s26, 1 }
  0x10   : > { %p3125_p6 = por %p215_p3, %p56_p0  ;;  %p222_p7 = scmp.lt.s32.totalorder %s3030_s26, 3 }
  0x11   : > { %s3777_s1 = sld [smem:[#allocation24_spill]]  ;;  %s3032_s13 = smov [#allocation5]  }
  0x12   : > { %p3133_p8 = pnand %p2023_p5, %p222_p7  ;;  %s237_s14 = sshll.u32 %s3032_s13, 4  ;;  %s238_s14 = int_to_ptr.vmem [resolvable:$true] %s237_s14 }
  0x13   : > { %p2028_p11 = scmp.ge.s32.totalorder %s3030_s26, 2  ;;  %s3780_s2 = sld [smem:[#allocation25_spill]] }
  0x14   : > { %p2735_p9 = pneg %p3133_p8  ;;  %s3752_s19 = smov 64  }
  0x15   : > { %s3034_s20 = smov 4   ;;  %s3035_s27 = smov [#allocation7]  }
  0x16   : > { %p3141_p10 = pnand %p2735_p9, %p3110_p1  ;;  %s255_s28 = sshll.u32 %s3035_s27, 4  ;;  %s256_s28 = int_to_ptr.vmem [resolvable:$true] %s255_s28 }
  0x17   : > { %s235_s11 = sshll.u32 %s3777_s1, 4  ;;  %s3036_s9 = smov 128   ;;  %s236_s11 = int_to_ptr.hbm [resolvable:$true] %s235_s11 }
  0x18   : > { %2738 = dma.hbm_to_vmem [thread:$0]  (!%p3141_p10), %s236_s11, 3072, %s238_s14, [#allocation6], %s3752_s19, %s3752_s19, %s3034_s20  }
  0x19   : > { %s253_s18 = sshll.u32 %s3780_s2, 4  ;;  %s3037_s10 = smov 8   ;;  %s254_s18 = int_to_ptr.hbm [resolvable:$true] %s253_s18 }
  0x1a   : > { %2741 = dma.hbm_to_vmem [thread:$0]  (!%p3141_p10), %s254_s18, 2048, %s256_s28, [#allocation6], %s3036_s9, %s3036_s9, %s3037_s10  }
  0x1b   : > { %s3781_s4 = sld [smem:[#allocation26_spill]]  ;;  %s3038_s1 = smov [#allocation8]  }
  0x1c   : > { %s277_s2 = sshll.u32 %s3038_s1, 4  ;;  %s43_s11 = sadd.s32 1, %s3018_s23  ;;  %s278_s2 = int_to_ptr.vmem [resolvable:$true] %s277_s2 }
  0x1d   : > { %s36_s14 = sadd.s32 1, %s3026_s25  ;;  %p50_p12 = scmp.ne.s32.totalorder %s3018_s23, %s3014_s22 }
  0x1e   : > { %p38_p13 = scmp.ge.s32.totalorder %s36_s14, 2  ;;  %p51_p0 = scmp.eq.s32.totalorder %s3030_s26, 0 }
  0x1f   : > { %p3168_p3 = por %p3114_p2, %p50_p12  ;;  %p2756_p5 = scmp.lt.s32.totalorder %s3030_s26, 2 }
  0x20   : > { %s3810_s14 = smov (%p38_p13, %s36_s14), 0  ;;  %p52_p7 = por %p51_p0, %p50_p12 }
  0x21   : > { %s275_s17 = sshll.u32 %s3781_s4, 4  ;;  %s291_s1 = sand.u32 1, %s3018_s23   ;;  %s276_s17 = int_to_ptr.hbm [resolvable:$true] %s275_s17 }
  0x22   : > { %2744 = dma.hbm_to_vmem [thread:$0]  (!%p3141_p10), %s276_s17, 16, %s278_s2, [#allocation9]  }
  0x23   : > { %s40_s27 = ssub.s32 %s3026_s25, %s3810_s14  ;;  %s2716_s2 = smul.u32 216, %s291_s1 }
  0x24   : > { %p41_p9 = scmp.eq.s32.totalorder %s40_s27, 0  ;;  %s2717_s15 = smul.u32 216, %s3026_s25 }
  0x25   : > { %p2746_p10 = pnand %p2756_p5, %p52_p7  ;;  %s295_s16 = scalar_lea.vmem [#allocation2], %s2716_s2 }
  0x26   : > { %s3180_s28 = scalar_select %p41_p9, %s3018_s23, %s43_s11  }
  0x27   : > { %s300_s30 = scalar_lea.hbm %s3745_s0, %s2717_s15  ;;  %s303_s17 = sshll.u32 %s295_s16, 4  ;;  %s304_s17 = int_to_ptr.vmem [resolvable:$true] %s303_s17 }
  0x28   : > { %s301_s13 = sshll.u32 %s300_s30, 4  ;;  %s292_s19 = scalar_lea.sflag [#allocation3], %s291_s1  ;;  %s302_s13 = int_to_ptr.hbm [resolvable:$true] %s301_s13 }
  0x29   : > { %s3783_s4 = smov 64   ;;  %315 = sbr.rel (%p3133_p8) target bundleno = 1020 (0x3fc), region = 44 }
  0x2a   : > { %2748 = dma.hbm_to_vmem [thread:$0]  (!%p2746_p10), %s302_s13, 3456, %s304_s17, %s292_s19, %s3783_s4, %s3783_s4, %s3034_s20  }
  0x2e   : > { %s3191_s11 = sand.u32 1, %s3014_s22  }
  0x2f   : > { %s2718_s27 = smul.u32 216, %s3191_s11  ;;  %s318_s15 = scalar_lea.sflag [#allocation3], %s3191_s11 }
  0x31   : > { %s3195_s2 = scalar_lea.vmem [#allocation2], %s2718_s27 }
  0x32   : > { %2993 = dma.done.wait (%p3120_p4), %s318_s15, 3456  }
  0x33   : > { %2995 = vsyncadd (%p3120_p4), %s318_s15, 4294963840 }
  0x34   : > { %2997 = dma.done.wait (%p3110_p1), [#allocation6], 5120  }
  0x35   : > { %2999 = vsyncadd (%p3110_p1), [#allocation6], 4294962176 }
  0x36   : > { %3001 = dma.done.wait (%p3110_p1), [#allocation9], 16  }
  0x37   : > { %3003 = vsyncadd (%p3110_p1), [#allocation9], 4294967280  ;;  %v2287_v0 = vld [vmem:[#allocation5 + $0x78] sm:$0xff]  ;;  %v2286_v3 = vld [vmem:[#allocation5 + $0x70] sm:$0xff]  ;;  %s2034_s19 = sshll.u32 %s3191_s11, 7  ;;  %s2320_s1 = sshll.u32 %s3022_s24, 7 }
  0x38   : > { %v2278_v1 = vld [vmem:[#allocation5 + $0x38] sm:$0xff]  ;;  %649 = vmatpush.bf16.msra.mxu0 %v2287_v0  ;;  %v2277_v4 = vld [vmem:[#allocation5 + $0x30] sm:$0xff]  ;;  %2646 = vmatpush.bf16.msra.mxu3 %v2287_v0  ;;  %v2285_v6 = vld [vmem:[#allocation5 + $0x68] sm:$0xff]  ;;  %s3681_s20 = scalar_lea.vmem [#allocation10], %s2034_s19  ;;  %s1886_s10 = scalar_lea.hbm %s3751_s6, %s2320_s1 }
  0x39   : > { %v3209_v2 = vld [vmem:[#allocation5 + $0xb8] sm:$0xff]  ;;  %880 = vmatpush.bf16.msra.mxu1 %v2278_v1  ;;  %v3212_v5 = vld [vmem:[#allocation5 + $0xb0] sm:$0xff]  ;;  %v2276_v7 = vld [vmem:[#allocation5 + $0x28] sm:$0xff]  ;;  %s1887_s30 = sshll.u32 %s3681_s20, 4  ;;  %s1889_s13 = sshll.u32 %s1886_s10, 4  ;;  %s1888_s30 = int_to_ptr.vmem [resolvable:$true] %s1887_s30  ;;  %s1890_s13 = int_to_ptr.hbm [resolvable:$true] %s1889_s13 }
  0x3a   : > { %1266 = vmatpush.bf16.msra.mxu2 %v3209_v2  ;;  %v3215_v8 = vld [vmem:[#allocation5 + $0xa8] sm:$0xff]  ;;  %v2284_v9 = vld [vmem:[#allocation5 + $0x60] sm:$0xff]  ;;  %v2283_v12 = vld [vmem:[#allocation5 + $0x58] sm:$0xff]  ;;  %s1874_s16 = scalar_lea.sflag [#allocation4], %s3191_s11  ;;  %s2954_s17 = sshra.s32 %s1890_s13, 4  ;;  %s2955_s17 = int_to_ptr.hbm [resolvable:$true] %s2954_s17 }
  0x3b   : > { %v2275_v10 = vld [vmem:[#allocation5 + $0x20] sm:$0xff]  ;;  %v2274_v13 = vld [vmem:[#allocation5 + $0x18] sm:$0xff]  ;;  %v2282_v15 = vld [vmem:[#allocation5 + $0x50] sm:$0xff]  ;;  %s2956_s27 = scalar_lea.hbm %s2955_s17, 128  ;;  %s2960_s4 = scalar_lea.hbm %s3751_s6, 256 }
  0x3c   : > { %650 = vmatpush.bf16.msra.mxu0 %v2286_v3  ;;  %2647 = vmatpush.bf16.msra.mxu3 %v2286_v3  ;;  %v3218_v11 = vld [vmem:[#allocation5 + $0xa0] sm:$0xff]  ;;  %v3221_v14 = vld [vmem:[#allocation5 + $0x98] sm:$0xff]  ;;  %v2273_v16 = vld [vmem:[#allocation5 + $0x10] sm:$0xff]  ;;  %p2957_p1 = scmp.ne.s32.totalorder %s2955_s17, %s2956_s27  ;;  %p2961_p8 = scmp.lt.s32.totalorder %s2955_s17, %s3751_s6 }
  0x3d   : > { %881 = vmatpush.bf16.msra.mxu1 %v2277_v4  ;;  %v3224_v17 = vld [vmem:[#allocation5 + $0x90] sm:$0xff]  ;;  %v2281_v18 = vld [vmem:[#allocation5 + $0x48] sm:$0xff]  ;;  %v2280_v21 = vld [vmem:[#allocation5 + $0x40] sm:$0xff]  ;;  %p2962_p12 = scmp.lt.s32.totalorder %s2960_s4, %s2956_s27 }
  0x3e   : > { %1267 = vmatpush.bf16.msra.mxu2 %v3212_v5  ;;  %v2272_v19 = vld [vmem:[#allocation5 + $0x8] sm:$0xff]  ;;  %v2271_v22 = vld [vmem:[#allocation5] sm:$0xff]  ;;  %v2493_v28 = vld [vmem:[%s3195_s2 + $0x8] sm:$0xff]   ;;  %p2958_p2 = pnand %p2957_p1, %p3168_p3 }
  0x3f   : > { %v3227_v20 = vld [vmem:[#allocation5 + $0x88] sm:$0xff]  ;;  %v3230_v23 = vld [vmem:[#allocation5 + $0x80] sm:$0xff]  ;;  %v2290_v32 = vld [vmem:[%s3195_s2 + $0x28] sm:$0xff]  ;;  %p2963_p13 = por %p2962_p12, %p2961_p8 }
  0x40   : > { %651 = vmatpush.bf16.msra.mxu0 %v2285_v6  ;;  %2648 = vmatpush.bf16.msra.mxu3 %v2285_v6  ;;  %v2672_v24 = vld [vmem:[%s3195_s2 + $0xc] sm:$0xff]   ;;  %v2270_v25 = vld [vmem:[%s3195_s2] sm:$0xff]  ;;  %v2288_v26 = vld [vmem:[%s3195_s2 + $0x18] sm:$0xff]  ;;  %p2959_p4 = pneg %p2958_p2 }
  0x41   : > { %882 = vmatpush.bf16.msra.mxu1 %v2276_v7  ;;  %v2674_v27 = vld [vmem:[%s3195_s2 + $0x14] sm:$0xff]   ;;  %v2289_v29 = vld [vmem:[%s3195_s2 + $0x20] sm:$0xff]  ;;  %v2680_v36 = vld [vmem:[%s3195_s2 + $0x2c] sm:$0xff]  }
  0x42   : > { %1268 = vmatpush.bf16.msra.mxu2 %v3215_v8  ;;  %v2676_v30 = vld [vmem:[%s3195_s2 + $0x1c] sm:$0xff]   ;;  %v2494_v31 = vld [vmem:[%s3195_s2 + $0x10] sm:$0xff]   ;;  %v2678_v33 = vld [vmem:[%s3195_s2 + $0x24] sm:$0xff]   ;;  %p2964_p0 = pnand %p2963_p13, %p2959_p4 }
  0x43   : > { %v2495_v34 = vld [vmem:[%s3195_s2 + $0x18] sm:$0xff]   ;;  %v2291_v35 = vld [vmem:[%s3195_s2 + $0x30] sm:$0xff]  ;;  %v2496_v37 = vld [vmem:[%s3195_s2 + $0x20] sm:$0xff]  }
  0x44   : > { %652 = vmatpush.bf16.msra.mxu0 %v2284_v9  ;;  %2649 = vmatpush.bf16.msra.mxu3 %v2284_v9  ;;  %v2292_v38 = vld [vmem:[%s3195_s2 + $0x38] sm:$0xff]  ;;  %v2497_v40 = vld [vmem:[%s3195_s2 + $0x28] sm:$0xff]   ;;  %v2293_v41 = vld [vmem:[%s3195_s2 + $0x40] sm:$0xff] }
  0x45   : > { %883 = vmatpush.bf16.msra.mxu1 %v2275_v10  ;;  %v2682_v39 = vld [vmem:[%s3195_s2 + $0x34] sm:$0xff]   ;;  %v2684_v42 = vld [vmem:[%s3195_s2 + $0x3c] sm:$0xff]   ;;  %v2294_v44 = vld [vmem:[%s3195_s2 + $0x48] sm:$0xff] }
  0x46   : > { %1269 = vmatpush.bf16.msra.mxu2 %v3218_v11  ;;  %v2498_v43 = vld [vmem:[%s3195_s2 + $0x30] sm:$0xff]   ;;  %v2686_v45 = vld [vmem:[%s3195_s2 + $0x44] sm:$0xff]   ;;  %v2499_v46 = vld [vmem:[%s3195_s2 + $0x38] sm:$0xff]  }
  0x47   : > { %v2295_v47 = vld [vmem:[%s3195_s2 + $0x50] sm:$0xff]  ;;  %v2500_v51 = vld [vmem:[%s3195_s2 + $0x40] sm:$0xff]   ;;  %v2296_v52 = vld [vmem:[%s3195_s2 + $0x58] sm:$0xff] }
  0x48   : > { %653 = vmatpush.bf16.msra.mxu0 %v2283_v12  ;;  %2650 = vmatpush.bf16.msra.mxu3 %v2283_v12  ;;  %v2688_v48 = vld [vmem:[%s3195_s2 + $0x4c] sm:$0xff]   ;;  %v2690_v60 = vld [vmem:[%s3195_s2 + $0x54] sm:$0xff]  }
  0x49   : > { %884 = vmatpush.bf16.msra.mxu1 %v2274_v13  ;;  %v2501_v0 = vld [vmem:[%s3195_s2 + $0x48] sm:$0xff]  }
  0x4a   : > { %1270 = vmatpush.bf16.msra.mxu2 %v3221_v14 }
  0x4c   : > { %654 = vmatpush.bf16.msra.mxu0 %v2282_v15  ;;  %2651 = vmatpush.bf16.msra.mxu3 %v2282_v15  ;;  %v2692_v15 = vld [vmem:[%s3195_s2 + $0x5c] sm:$0xff]  }
  0x4d   : > { %885 = vmatpush.bf16.msra.mxu1 %v2273_v16 }
  0x4e   : > { %1271 = vmatpush.bf16.msra.mxu2 %v3224_v17 }
  0x50   : > { %655 = vmatpush.bf16.msra.mxu0 %v2281_v18  ;;  %2652 = vmatpush.bf16.msra.mxu3 %v2281_v18 }
  0x51   : > { %886 = vmatpush.bf16.msra.mxu1 %v2272_v19 }
  0x52   : > { %1272 = vmatpush.bf16.msra.mxu2 %v3227_v20 }
  0x54   : > { %656 = vmatpush.bf16.msra.mxu0 %v2280_v21  ;;  %2653 = vmatpush.bf16.msra.mxu3 %v2280_v21  ;;  %v2502_v21 = vld [vmem:[%s3195_s2 + $0x50] sm:$0xff]  }
  0x55   : > { %887 = vmatpush.bf16.msra.mxu1 %v2271_v22 }
  0x56   : > { %1273 = vmatpush.bf16.msra.mxu2 %v3230_v23 }
  0x57   : > { %657 = vmatmul.bf16.vlgmr.msra.gmra.mxu0 %v2672_v24  ;;  %v2279_v24 = vld [vmem:[%s3195_s2 + $0xc4] sm:$0xff] }
  0x58   : > { %2654 = vmatpush.bf16.msrb.mxu3 %v2278_v1  ;;  %888 = vmatmul.bf16.vlgmr.msra.gmra.mxu1 %v2270_v25  ;;  %v2297_v1 = vld [vmem:[%s3195_s2 + $0x60] sm:$0xff] }
  0x59   : > { %1274 = vmatmul.bf16.vlgmr.msra.gmra.mxu2 %v2288_v26 }
  0x5c   : > { %2655 = vmatpush.bf16.msrb.mxu3 %v2277_v4  ;;  %v2715_v4 = vld [vmem:[%s3195_s2 + $0xbc] sm:$0xff] }
  0x5d   : > { %767 = vmatmul.bf16.vlgmr.msra.gmra.mxu3 %v2715_v4  ;;  %v2302_v4 = vld [vmem:[%s3195_s2 + $0x88] sm:$0xff] }
  0x60   : > { %2656 = vmatpush.bf16.msrb.mxu3 %v2276_v7 }
  0x64   : > { %2657 = vmatpush.bf16.msrb.mxu3 %v2275_v10 }
  0x67   : > { %662 = vmatmul.bf16.gmra.mxu0 %v2674_v27 }
  0x68   : > { %2658 = vmatpush.bf16.msrb.mxu3 %v2274_v13  ;;  %893 = vmatmul.bf16.gmra.mxu1 %v2493_v28 }
  0x69   : > { %1279 = vmatmul.bf16.gmra.mxu2 %v2289_v29  ;;  %v2694_v29 = vld [vmem:[%s3195_s2 + $0x64] sm:$0xff]  }
  0x6c   : > { %2659 = vmatpush.bf16.msrb.mxu3 %v2273_v16 }
  0x6d   : > { %772 = vmatmul.bf16.gmra.mxu3 %v2279_v24 }
  0x70   : > { %2660 = vmatpush.bf16.msrb.mxu3 %v2272_v19 }
  0x74   : > { %2661 = vmatpush.bf16.msrb.mxu3 %v2271_v22  ;;  %v2298_v22 = vld [vmem:[%s3195_s2 + $0x68] sm:$0xff] }
  0x77   : > { %667 = vmatmul.bf16.gmra.mxu0 %v2676_v30 }
  0x78   : > { %898 = vmatmul.bf16.gmra.mxu1 %v2494_v31  ;;  %2662 = vmatpush.bf16.msra.mxu3 %v3209_v2 }
  0x79   : > { %1284 = vmatmul.bf16.gmra.mxu2 %v2290_v32 }
  0x7c   : > { %2663 = vmatpush.bf16.msra.mxu3 %v3212_v5 }
  0x80   : > { %2664 = vmatpush.bf16.msra.mxu3 %v3215_v8 }
  0x84   : > { %2665 = vmatpush.bf16.msra.mxu3 %v3218_v11  ;;  %v2299_v11 = vld [vmem:[%s3195_s2 + $0x70] sm:$0xff] }
  0x87   : > { %672 = vmatmul.bf16.gmra.mxu0 %v2678_v33  ;;  %v2503_v33 = vld [vmem:[%s3195_s2 + $0x58] sm:$0xff]  }
  0x88   : > { %903 = vmatmul.bf16.gmra.mxu1 %v2495_v34  ;;  %2666 = vmatpush.bf16.msra.mxu3 %v3221_v14  ;;  %v2514_v14 = vld [vmem:[%s3195_s2 + $0xb0] sm:$0xff]  }
  0x89   : > { %1289 = vmatmul.bf16.gmra.mxu2 %v2291_v35  ;;  %998 = vmatmul.bf16.vlgmr.msrb.gmra.mxu3 %v2514_v14 }
  0x8c   : > { %2667 = vmatpush.bf16.msra.mxu3 %v3224_v17 }
  0x90   : > { %2668 = vmatpush.bf16.msra.mxu3 %v3227_v20 }
  0x94   : > { %2669 = vmatpush.bf16.msra.mxu3 %v3230_v23 }
  0x97   : > { %677 = vmatmul.bf16.gmra.mxu0 %v2680_v36 }
  0x98   : > { %908 = vmatmul.bf16.gmra.mxu1 %v2496_v37 }
  0x99   : > { %1294 = vmatmul.bf16.gmra.mxu2 %v2292_v38 }
  0xa7   : > { %682 = vmatmul.bf16.gmra.mxu0 %v2682_v39 }
  0xa8   : > { %913 = vmatmul.bf16.gmra.mxu1 %v2497_v40  ;;  %v2696_v40 = vld [vmem:[%s3195_s2 + $0x6c] sm:$0xff]  }
  0xa9   : > { %1299 = vmatmul.bf16.gmra.mxu2 %v2293_v41 }
  0xb7   : > { %687 = vmatmul.bf16.gmra.mxu0 %v2684_v42 }
  0xb8   : > { %918 = vmatmul.bf16.gmra.mxu1 %v2498_v43  ;;  %v2504_v43 = vld [vmem:[%s3195_s2 + $0x60] sm:$0xff]  }
  0xb9   : > { %1304 = vmatmul.bf16.gmra.mxu2 %v2294_v44  ;;  %v2300_v44 = vld [vmem:[%s3195_s2 + $0x78] sm:$0xff] }
  0xc7   : > { %692 = vmatmul.bf16.gmra.mxu0 %v2686_v45  ;;  %v2515_v45 = vld [vmem:[%s3195_s2 + $0xb8] sm:$0xff]  }
  0xc8   : > { %923 = vmatmul.bf16.gmra.mxu1 %v2499_v46  ;;  %1003 = vmatmul.bf16.gmra.mxu3 %v2515_v45 }
  0xc9   : > { %1309 = vmatmul.bf16.gmra.mxu2 %v2295_v47 }
  0xd4   : > { %v658_v49 = vpop.f32.mrf.mxu0 }
  0xd5   : > { %v889_v50 = vpop.f32.mrf.mxu1 }
  0xd6   : > { %v890_v53 = vadd.f32 %v889_v50, %v658_v49 }
  0xd7   : > { %697 = vmatmul.bf16.gmra.mxu0 %v2688_v48 }
  0xd8   : > { %928 = vmatmul.bf16.gmra.mxu1 %v2500_v51  ;;  %v2698_v51 = vld [vmem:[%s3195_s2 + $0x74] sm:$0xff]  }
  0xd9   : > { %1314 = vmatmul.bf16.gmra.mxu2 %v2296_v52 }
  0xdc   : > { %v1275_v54 = vpop.f32.mrf.mxu2  ;;  %v660_v56 = vpop.f32.mrf.mxu0 }
  0xdd   : > { %v3260_v55 = vadd.f32 %v1275_v54, %v890_v53  ;;  %v891_v57 = vpop.f32.mrf.mxu1  ;;  %v2505_v54 = vld [vmem:[%s3195_s2 + $0x68] sm:$0xff]  }
  0xde   : > { %v892_v58 = vadd.f32 %v891_v57, %v660_v56  ;;  %v2301_v56 = vld [vmem:[%s3195_s2 + $0x80] sm:$0xff]  ;;  %v2310_v57 = vld [vmem:[%s3195_s2 + $0xc8] sm:$0xff] }
  0xdf   : > { %3784 = vst [vmem:[#allocation15_spill] sm:$0xff] %v3260_v55  ;;  %1384 = vmatmul.bf16.vlgmr.msra.gmra.mxu3 %v2310_v57 }
  0xe4   : > { %v1277_v59 = vpop.f32.mrf.mxu2  ;;  %v663_v62 = vpop.f32.mrf.mxu0 }
  0xe5   : > { %v3263_v61 = vadd.f32 %v1277_v59, %v892_v58  ;;  %v894_v63 = vpop.f32.mrf.mxu1 }
  0xe6   : > { %v895_v3 = vadd.f32 %v894_v63, %v663_v62  ;;  %v2700_v63 = vld [vmem:[%s3195_s2 + $0x7c] sm:$0xff]  }
  0xe7   : > { %702 = vmatmul.bf16.gmra.mxu0 %v2690_v60 }
  0xe8   : > { %933 = vmatmul.bf16.gmra.mxu1 %v2501_v0 }
  0xe9   : > { %1319 = vmatmul.bf16.gmra.mxu2 %v2297_v1 }
  0xec   : > { %v1280_v6 = vpop.f32.mrf.mxu2  ;;  %v665_v9 = vpop.f32.mrf.mxu0 }
  0xed   : > { %v3269_v7 = vadd.f32 %v1280_v6, %v895_v3  ;;  %v896_v10 = vpop.f32.mrf.mxu1  ;;  %v2506_v3 = vld [vmem:[%s3195_s2 + $0x70] sm:$0xff]  }
  0xee   : > { %v897_v12 = vadd.f32 %v896_v10, %v665_v9  ;;  %v2311_v6 = vld [vmem:[%s3195_s2 + $0xd0] sm:$0xff] }
  0xef   : > { %1389 = vmatmul.bf16.gmra.mxu3 %v2311_v6 }
  0xf4   : > { %v1282_v13 = vpop.f32.mrf.mxu2  ;;  %v668_v18 = vpop.f32.mrf.mxu0 }
  0xf5   : > { %v3274_v16 = vadd.f32 %v1282_v13, %v897_v12  ;;  %v899_v19 = vpop.f32.mrf.mxu1 }
  0xf6   : > { %v900_v2 = vadd.f32 %v899_v19, %v668_v18 }
  0xf7   : > { %707 = vmatmul.bf16.gmra.mxu0 %v2692_v15  ;;  %v2702_v15 = vld [vmem:[%s3195_s2 + $0x84] sm:$0xff]  }
  0xf8   : > { %938 = vmatmul.bf16.gmra.mxu1 %v2502_v21  ;;  %v2507_v21 = vld [vmem:[%s3195_s2 + $0x78] sm:$0xff]  }
  0xf9   : > { %1324 = vmatmul.bf16.gmra.mxu2 %v2298_v22  ;;  %v2303_v22 = vld [vmem:[%s3195_s2 + $0x90] sm:$0xff] }
  0xfc   : > { %v1285_v5 = vpop.f32.mrf.mxu2  ;;  %v670_v8 = vpop.f32.mrf.mxu0 }
  0xfd   : > { %v3280_v25 = vadd.f32 %v1285_v5, %v900_v2  ;;  %v901_v26 = vpop.f32.mrf.mxu1 }
  0xfe   : > { %v902_v27 = vadd.f32 %v901_v26, %v670_v8 }
 0x104   : > { %v1287_v28 = vpop.f32.mrf.mxu2  ;;  %v673_v31 = vpop.f32.mrf.mxu0 }
 0x105   : > { %v3285_v30 = vadd.f32 %v1287_v28, %v902_v27  ;;  %v904_v32 = vpop.f32.mrf.mxu1  ;;  %v2704_v28 = vld [vmem:[%s3195_s2 + $0x8c] sm:$0xff]  }
 0x106   : > { %v905_v34 = vadd.f32 %v904_v32, %v673_v31 }
 0x107   : > { %712 = vmatmul.bf16.gmra.mxu0 %v2694_v29 }
 0x108   : > { %943 = vmatmul.bf16.gmra.mxu1 %v2503_v33  ;;  %v2508_v33 = vld [vmem:[%s3195_s2 + $0x80] sm:$0xff]  }
 0x109   : > { %1329 = vmatmul.bf16.gmra.mxu2 %v2299_v11  ;;  %v2304_v11 = vld [vmem:[%s3195_s2 + $0x98] sm:$0xff] }
 0x10c   : > { %v1290_v17 = vpop.f32.mrf.mxu2  ;;  %v675_v36 = vpop.f32.mrf.mxu0 }
 0x10d   : > { %v3292_v35 = vadd.f32 %v1290_v17, %v905_v34  ;;  %v906_v37 = vpop.f32.mrf.mxu1 }
 0x10e   : > { %v907_v38 = vadd.f32 %v906_v37, %v675_v36 }
 0x114   : > { %v1292_v39 = vpop.f32.mrf.mxu2  ;;  %v678_v41 = vpop.f32.mrf.mxu0 }
 0x115   : > { %v3295_v20 = vadd.f32 %v1292_v39, %v907_v38  ;;  %v909_v42 = vpop.f32.mrf.mxu1 }
 0x116   : > { %v910_v23 = vadd.f32 %v909_v42, %v678_v41 }
 0x117   : > { %717 = vmatmul.bf16.gmra.mxu0 %v2696_v40 }
 0x118   : > { %948 = vmatmul.bf16.gmra.mxu1 %v2504_v43 }
 0x119   : > { %1334 = vmatmul.bf16.gmra.mxu2 %v2300_v44 }
 0x11c   : > { %v1295_v46 = vpop.f32.mrf.mxu2  ;;  %v3302_v48 = vpop.f32.mrf.mxu0 }
 0x11d   : > { %v3300_v47 = vadd.f32 %v1295_v46, %v910_v23  ;;  %v3304_v49 = vpop.f32.mrf.mxu1 }
 0x11e   : > { %v912_v46 = vadd.f32 %v3304_v49, %v3302_v48  ;;  %v2509_v48 = vld [vmem:[%s3195_s2 + $0x88] sm:$0xff]   ;;  %v2305_v49 = vld [vmem:[%s3195_s2 + $0xa0] sm:$0xff] }
 0x124   : > { %v3306_v50 = vpop.f32.mrf.mxu2  ;;  %v683_v52 = vpop.f32.mrf.mxu0 }
 0x125   : > { %v914_v53 = vpop.f32.mrf.mxu1 }
 0x126   : > { %v915_v38 = vadd.f32 %v914_v53, %v683_v52  ;;  %v3344_v52 = vadd.f32 %v3306_v50, %v912_v46  ;;  %v2512_v46 = vld [vmem:[%s3195_s2 + $0xa0] sm:$0xff]  }
 0x127   : > { %722 = vmatmul.bf16.gmra.mxu0 %v2698_v51 }
 0x128   : > { %953 = vmatmul.bf16.gmra.mxu1 %v2505_v54  ;;  %v2706_v54 = vld [vmem:[%s3195_s2 + $0x94] sm:$0xff]  }
 0x129   : > { %1339 = vmatmul.bf16.gmra.mxu2 %v2301_v56 }
 0x12c   : > { %v1300_v58 = vpop.f32.mrf.mxu2  ;;  %v685_v59 = vpop.f32.mrf.mxu0 }
 0x12d   : > { %v916_v60 = vpop.f32.mrf.mxu1  ;;  %v3340_v51 = vadd.f32 %v1300_v58, %v915_v38 }
 0x12e   : > { %v917_v39 = vadd.f32 %v916_v60, %v685_v59 }
 0x134   : > { %v1302_v62 = vpop.f32.mrf.mxu2  ;;  %v688_v0 = vpop.f32.mrf.mxu0 }
 0x135   : > { %v919_v1 = vpop.f32.mrf.mxu1  ;;  %v3333_v42 = vadd.f32 %v1302_v62, %v917_v39 }
 0x136   : > { %v920_v14 = vadd.f32 %v919_v1, %v688_v0 }
 0x137   : > { %727 = vmatmul.bf16.gmra.mxu0 %v2700_v63 }
 0x138   : > { %958 = vmatmul.bf16.gmra.mxu1 %v2506_v3  ;;  %v2708_v3 = vld [vmem:[%s3195_s2 + $0x9c] sm:$0xff]  }
 0x139   : > { %1344 = vmatmul.bf16.gmra.mxu2 %v2302_v4 }
 0x13c   : > { %v1305_v9 = vpop.f32.mrf.mxu2  ;;  %v690_v10 = vpop.f32.mrf.mxu0 }
 0x13d   : > { %v921_v12 = vpop.f32.mrf.mxu1  ;;  %v3330_v40 = vadd.f32 %v1305_v9, %v920_v14 }
 0x13e   : > { %v922_v17 = vadd.f32 %v921_v12, %v690_v10  ;;  %v2510_v10 = vld [vmem:[%s3195_s2 + $0x90] sm:$0xff]   ;;  %v2306_v12 = vld [vmem:[%s3195_s2 + $0xa8] sm:$0xff] }
 0x144   : > { %v1307_v13 = vpop.f32.mrf.mxu2  ;;  %v693_v18 = vpop.f32.mrf.mxu0 }
 0x145   : > { %v924_v19 = vpop.f32.mrf.mxu1  ;;  %v3327_v37 = vadd.f32 %v1307_v13, %v922_v17 }
 0x146   : > { %v925_v8 = vadd.f32 %v924_v19, %v693_v18 }
 0x147   : > { %732 = vmatmul.bf16.gmra.mxu0 %v2702_v15 }
 0x148   : > { %963 = vmatmul.bf16.gmra.mxu1 %v2507_v21 }
 0x149   : > { %1349 = vmatmul.bf16.gmra.mxu2 %v2303_v22 }
 0x14c   : > { %v1310_v2 = vpop.f32.mrf.mxu2  ;;  %v695_v24 = vpop.f32.mrf.mxu0 }
 0x14d   : > { %v926_v5 = vpop.f32.mrf.mxu1  ;;  %v3324_v36 = vadd.f32 %v1310_v2, %v925_v8  ;;  %v3371_v2 = vpop.f32.mrf.mxu3 }
 0x14e   : > { %v927_v26 = vadd.f32 %v926_v5, %v695_v24  ;;  %v2710_v5 = vld [vmem:[%s3195_s2 + $0xa4] sm:$0xff]  }
 0x154   : > { %v1312_v27 = vpop.f32.mrf.mxu2  ;;  %v698_v31 = vpop.f32.mrf.mxu0 }
 0x155   : > { %v3320_v29 = vadd.f32 %v1312_v27, %v927_v26  ;;  %v929_v32 = vpop.f32.mrf.mxu1 }
 0x156   : > { %v930_v34 = vadd.f32 %v929_v32, %v698_v31  ;;  %v2307_v31 = vld [vmem:[%s3195_s2 + $0xb0] sm:$0xff] }
 0x157   : > { %1451 = vmatpush.msrb.mxu3 %v3320_v29  ;;  %737 = vmatmul.bf16.gmra.mxu0 %v2704_v28  ;;  %v2511_v28 = vld [vmem:[%s3195_s2 + $0x98] sm:$0xff]  }
 0x158   : > { %968 = vmatmul.bf16.gmra.mxu1 %v2508_v33 }
 0x159   : > { %1354 = vmatmul.bf16.gmra.mxu2 %v2304_v11  ;;  %1452 = vmatpush.msrb.mxu3 %v3324_v36  ;;  %v3378_v11 = vpop.f32.mrf.mxu3 }
 0x15b   : > { %1453 = vmatpush.msrb.mxu3 %v3327_v37 }
 0x15c   : > { %v1315_v41 = vpop.f32.mrf.mxu2  ;;  %v700_v44 = vpop.f32.mrf.mxu0 }
 0x15d   : > { %v3335_v43 = vadd.f32 %v1315_v41, %v930_v34  ;;  %1454 = vmatpush.msrb.mxu3 %v3330_v40  ;;  %v931_v23 = vpop.f32.mrf.mxu1  ;;  %v2712_v41 = vld [vmem:[%s3195_s2 + $0xac] sm:$0xff]  }
 0x15e   : > { %v932_v45 = vadd.f32 %v931_v23, %v700_v44 }
 0x15f   : > { %3785 = vst [vmem:[#allocation16_spill] sm:$0xff] %v3335_v43  ;;  %1455 = vmatpush.msrb.mxu3 %v3333_v42 }
 0x161   : > { %1456 = vmatpush.msrb.mxu3 %v3340_v51 }
 0x163   : > { %1457 = vmatpush.msrb.mxu3 %v3344_v52 }
 0x164   : > { %v1317_v53 = vpop.f32.mrf.mxu2  ;;  %v703_v57 = vpop.f32.mrf.mxu0 }
 0x165   : > { %v3349_v56 = vadd.f32 %v1317_v53, %v932_v45  ;;  %1458 = vmatpush.msrb.mxu3 %v3300_v47  ;;  %v934_v59 = vpop.f32.mrf.mxu1  ;;  %v2308_v53 = vld [vmem:[%s3195_s2 + $0xb8] sm:$0xff] }
 0x166   : > { %v935_v58 = vadd.f32 %v934_v59, %v703_v57  ;;  %v3387_v57 = vpop.f32.mrf.mxu3 }
 0x167   : > { %3786 = vst [vmem:[#allocation17_spill] sm:$0xff] %v3349_v56  ;;  %1459 = vmatpush.msrb.mxu3 %v3295_v20  ;;  %742 = vmatmul.bf16.gmra.mxu0 %v2706_v54 }
 0x168   : > { %973 = vmatmul.bf16.gmra.mxu1 %v2509_v48 }
 0x169   : > { %1359 = vmatmul.bf16.gmra.mxu2 %v2305_v49  ;;  %1460 = vmatpush.msrb.mxu3 %v3292_v35 }
 0x16b   : > { %1461 = vmatpush.msrb.mxu3 %v3285_v30 }
 0x16c   : > { %v1320_v50 = vpop.f32.mrf.mxu2  ;;  %v705_v62 = vpop.f32.mrf.mxu0 }
 0x16d   : > { %v3357_v60 = vadd.f32 %v1320_v50, %v935_v58  ;;  %1462 = vmatpush.msrb.mxu3 %v3280_v25  ;;  %v936_v63 = vpop.f32.mrf.mxu1 }
 0x16e   : > { %v937_v0 = vadd.f32 %v936_v63, %v705_v62  ;;  %v3391_v50 = vpop.f32.mrf.mxu3  ;;  %v2714_v63 = vld [vmem:[%s3195_s2 + $0xb4] sm:$0xff]  }
 0x16f   : > { %3787 = vst [vmem:[#allocation18_spill] sm:$0xff] %v3357_v60  ;;  %1463 = vmatpush.msrb.mxu3 %v3274_v16 }
 0x171   : > { %1464 = vmatpush.msrb.mxu3 %v3269_v7 }
 0x173   : > { %1465 = vmatpush.msrb.mxu3 %v3263_v61 }
 0x174   : > { %v1322_v1 = vpop.f32.mrf.mxu2  ;;  %v708_v6 = vpop.f32.mrf.mxu0 }
 0x175   : > { %v3364_v4 = vadd.f32 %v1322_v1, %v937_v0  ;;  %1466 = vmatpush.msrb.mxu3 %v3260_v55  ;;  %v939_v9 = vpop.f32.mrf.mxu1 }
 0x176   : > { %v940_v13 = vadd.f32 %v939_v9, %v708_v6  ;;  %v2309_v6 = vld [vmem:[%s3195_s2 + $0xc0] sm:$0xff]  ;;  %v3396_v9 = vpop.f32.mrf.mxu3 }
 0x177   : > { %3788 = vst [vmem:[#allocation19_spill] sm:$0xff] %v3364_v4  ;;  %747 = vmatmul.bf16.gmra.mxu0 %v2708_v3  ;;  %v2513_v3 = vld [vmem:[%s3195_s2 + $0xa8] sm:$0xff]  }
 0x178   : > { %978 = vmatmul.bf16.gmra.mxu1 %v2510_v10 }
 0x179   : > { %1364 = vmatmul.bf16.gmra.mxu2 %v2306_v12 }
 0x17c   : > { %v1325_v15 = vpop.f32.mrf.mxu2  ;;  %v710_v19 = vpop.f32.mrf.mxu0 }
 0x17d   : > { %v3369_v18 = vadd.f32 %v1325_v15, %v940_v13  ;;  %v941_v21 = vpop.f32.mrf.mxu1 }
 0x17e   : > { %v942_v22 = vadd.f32 %v941_v21, %v710_v19  ;;  %v3398_v19 = vpop.f32.mrf.mxu3 }
 0x184   : > { %v1327_v24 = vpop.f32.mrf.mxu2  ;;  %v713_v26 = vpop.f32.mrf.mxu0 }
 0x185   : > { %v3374_v8 = vadd.f32 %v1327_v24, %v942_v22  ;;  %v944_v27 = vpop.f32.mrf.mxu1 }
 0x186   : > { %v945_v32 = vadd.f32 %v944_v27, %v713_v26  ;;  %v3400_v27 = vpop.f32.mrf.mxu3 }
 0x187   : > { %752 = vmatmul.bf16.gmra.mxu0 %v2710_v5 }
 0x188   : > { %983 = vmatmul.bf16.gmra.mxu1 %v2511_v28 }
 0x189   : > { %1369 = vmatmul.bf16.gmra.mxu2 %v2307_v31 }
 0x18c   : > { %v1330_v33 = vpop.f32.mrf.mxu2  ;;  %v715_v14 = vpop.f32.mrf.mxu0 }
 0x18d   : > { %v3380_v34 = vadd.f32 %v1330_v33, %v945_v32  ;;  %v946_v17 = vpop.f32.mrf.mxu1 }
 0x18e   : > { %v947_v38 = vadd.f32 %v946_v17, %v715_v14  ;;  %v1006_v33 = vpop.f32.mrf.mxu3 }
 0x194   : > { %v1332_v39 = vpop.f32.mrf.mxu2  ;;  %v718_v23 = vpop.f32.mrf.mxu0 }
 0x195   : > { %v3383_v44 = vadd.f32 %v1332_v39, %v947_v38  ;;  %v949_v45 = vpop.f32.mrf.mxu1 }
 0x196   : > { %v950_v54 = vadd.f32 %v949_v45, %v718_v23  ;;  %v3402_v39 = vpop.f32.mrf.mxu3  ;;  %v3407_v45 = vld [vmem:[%s3750_s5] sm:$0x7] }
 0x197   : > { %757 = vmatmul.bf16.gmra.mxu0 %v2712_v41 }
 0x198   : > { %988 = vmatmul.bf16.gmra.mxu1 %v2512_v46 }
 0x199   : > { %1374 = vmatmul.bf16.gmra.mxu2 %v2308_v53  ;;  %v3755_v53 = vperm.slane %v3407_v45, 0 }
 0x19b   : > { %1467 = vmatmul.f32.vlgmr.msrb.gmra.mxu3 %v3755_v53 }
 0x19c   : > { %v1335_v59 = vpop.f32.mrf.mxu2  ;;  %v720_v49 = vpop.f32.mrf.mxu0 }
 0x19d   : > { %v3389_v48 = vadd.f32 %v1335_v59, %v950_v54  ;;  %v951_v58 = vpop.f32.mrf.mxu1 }
 0x1a4   : > { %v1337_v62 = vpop.f32.mrf.mxu2  ;;  %v723_v0 = vpop.f32.mrf.mxu0 }
 0x1a5   : > { %v954_v1 = vpop.f32.mrf.mxu1 }
 0x1a7   : > { %762 = vmatmul.bf16.gmra.mxu0 %v2714_v63 }
 0x1a8   : > { %993 = vmatmul.bf16.gmra.mxu1 %v2513_v3 }
 0x1a9   : > { %1379 = vmatmul.bf16.gmra.mxu2 %v2309_v6 }
 0x1ac   : > { %v1340_v10 = vpop.f32.mrf.mxu2  ;;  %v725_v12 = vpop.f32.mrf.mxu0 }
 0x1ad   : > { %v956_v13 = vpop.f32.mrf.mxu1 }
 0x1b4   : > { %v1342_v15 = vpop.f32.mrf.mxu2  ;;  %v728_v21 = vpop.f32.mrf.mxu0 }
 0x1b5   : > { %v959_v22 = vpop.f32.mrf.mxu1 }
 0x1b6   : > { %v960_v6 = vadd.f32 %v959_v22, %v728_v21 }
 0x1bc   : > { %v1345_v24 = vpop.f32.mrf.mxu2  ;;  %v730_v5 = vpop.f32.mrf.mxu0 }
 0x1bd   : > { %v961_v26 = vpop.f32.mrf.mxu1 }
 0x1be   : > { %v962_v55 = vadd.f32 %v961_v26, %v730_v5  ;;  %v952_v26 = vadd.f32 %v951_v58, %v720_v49 }
 0x1c4   : > { %v1347_v28 = vpop.f32.mrf.mxu2  ;;  %v733_v31 = vpop.f32.mrf.mxu0 }
 0x1c5   : > { %v964_v32 = vpop.f32.mrf.mxu1 }
 0x1c6   : > { %v965_v41 = vadd.f32 %v964_v32, %v733_v31  ;;  %v3417_v32 = vadd.f32 %v1347_v28, %v962_v55 }
 0x1cc   : > { %v1350_v14 = vpop.f32.mrf.mxu2  ;;  %v735_v17 = vpop.f32.mrf.mxu0 }
 0x1cd   : > { %v966_v38 = vpop.f32.mrf.mxu1  ;;  %v3414_v31 = vadd.f32 %v1350_v14, %v965_v41 }
 0x1ce   : > { %v967_v23 = vadd.f32 %v966_v38, %v735_v17  ;;  %v955_v17 = vadd.f32 %v954_v1, %v723_v0  ;;  %v957_v38 = vadd.f32 %v956_v13, %v725_v12  ;;  %v3431_v0 = vadd.f32 %v1337_v62, %v952_v26 }
 0x1d0   : > { %v3428_v28 = vadd.f32 %v1340_v10, %v955_v17  ;;  %v1005_v17 = vadd.f32 %v3400_v27, %v3387_v57 }
 0x1d4   : > { %v1352_v46 = vpop.f32.mrf.mxu2  ;;  %v738_v59 = vpop.f32.mrf.mxu0 }
 0x1d5   : > { %v3410_v54 = vadd.f32 %v1352_v46, %v967_v23  ;;  %v969_v63 = vpop.f32.mrf.mxu1  ;;  %v3420_v23 = vadd.f32 %v1345_v24, %v960_v6  ;;  %v1387_v46 = vpop.f32.mrf.mxu3 }
 0x1d6   : > { %v970_v3 = vadd.f32 %v969_v63, %v738_v59  ;;  %v3423_v63 = vadd.f32 %v1342_v15, %v957_v38  ;;  %v1002_v38 = vadd.f32 %v3398_v19, %v3378_v11 }
 0x1d7   : > { %1471 = vmatpush.msra.mxu3 %v3410_v54 }
 0x1d8   : > { %v3462_v27 = vadd.f32 %v1387_v46, %v1002_v38 }
 0x1d9   : > { %1472 = vmatpush.msra.mxu3 %v3414_v31 }
 0x1da   : > { %3791 = vst [vmem:[#allocation22_spill] sm:$0xff] %v3462_v27 }
 0x1db   : > { %1473 = vmatpush.msra.mxu3 %v3417_v32 }
 0x1dc   : > { %v1355_v59 = vpop.f32.mrf.mxu2  ;;  %v740_v22 = vpop.f32.mrf.mxu0 }
 0x1dd   : > { %v3425_v21 = vadd.f32 %v1355_v59, %v970_v3  ;;  %1474 = vmatpush.msra.mxu3 %v3420_v23  ;;  %v971_v5 = vpop.f32.mrf.mxu1  ;;  %v1390_v14 = vpop.f32.mrf.mxu3  ;;  %v1007_v3 = vadd.f32 %v1006_v33, %v3391_v50  ;;  %v1000_v33 = vadd.f32 %v3396_v9, %v3371_v2 }
 0x1de   : > { %v972_v55 = vadd.f32 %v971_v5, %v740_v22  ;;  %v3459_v26 = vadd.f32 %v1390_v14, %v1005_v17 }
 0x1df   : > { %1475 = vmatpush.msra.mxu3 %v3423_v63  ;;  %v3466_v11 = vadd.f32 %v3402_v39, %v1000_v33 }
 0x1e0   : > { %3790 = vst [vmem:[#allocation21_spill] sm:$0xff] %v3459_v26 }
 0x1e1   : > { %1476 = vmatpush.msra.mxu3 %v3428_v28  ;;  %3792 = vst [vmem:[#allocation23_spill] sm:$0xff] %v3466_v11 }
 0x1e3   : > { %1477 = vmatpush.msra.mxu3 %v3431_v0 }
 0x1e4   : > { %v1357_v1 = vpop.f32.mrf.mxu2  ;;  %v743_v13 = vpop.f32.mrf.mxu0 }
 0x1e5   : > { %v3435_v12 = vadd.f32 %v1357_v1, %v972_v55  ;;  %1478 = vmatpush.msra.mxu3 %v3389_v48  ;;  %v974_v15 = vpop.f32.mrf.mxu1  ;;  %v1392_v6 = vpop.f32.mrf.mxu3 }
 0x1e6   : > { %v975_v24 = vadd.f32 %v974_v15, %v743_v13  ;;  %v3452_v59 = vadd.f32 %v1392_v6, %v1007_v3 }
 0x1e7   : > { %1479 = vmatpush.msra.mxu3 %v3383_v44 }
 0x1e8   : > { %3789 = vst [vmem:[#allocation20_spill] sm:$0xff] %v3452_v59 }
 0x1e9   : > { %1480 = vmatpush.msra.mxu3 %v3380_v34 }
 0x1eb   : > { %1481 = vmatpush.msra.mxu3 %v3374_v8 }
 0x1ec   : > { %v1360_v49 = vpop.f32.mrf.mxu2  ;;  %v745_v62 = vpop.f32.mrf.mxu0 }
 0x1ed   : > { %v3441_v58 = vadd.f32 %v1360_v49, %v975_v24  ;;  %1482 = vmatpush.msra.mxu3 %v3369_v18  ;;  %v976_v10 = vpop.f32.mrf.mxu1 }
 0x1ee   : > { %v977_v41 = vadd.f32 %v976_v10, %v745_v62  ;;  %v3762_v62 = vperm.slane %v3407_v45, 1 }
 0x1ef   : > { %1483 = vmatpush.msra.mxu3 %v3364_v4 }
 0x1f1   : > { %1484 = vmatpush.msra.mxu3 %v3357_v60 }
 0x1f3   : > { %1485 = vmatpush.msra.mxu3 %v3349_v56 }
 0x1f4   : > { %v1362_v22 = vpop.f32.mrf.mxu2  ;;  %v748_v55 = vpop.f32.mrf.mxu0 }
 0x1f5   : > { %v3454_v5 = vadd.f32 %v1362_v22, %v977_v41  ;;  %1486 = vmatpush.msra.mxu3 %v3335_v43  ;;  %v979_v50 = vpop.f32.mrf.mxu1 }
 0x1f6   : > { %v980_v57 = vadd.f32 %v979_v50, %v748_v55  ;;  %1487 = vmatmul.f32.vlgmr.msra.gmra.mxu3 %v3762_v62 }
 0x1f7   : > { %1491 = vmatpush.msrb.mxu3 %v3452_v59 }
 0x1f9   : > { %1492 = vmatpush.msrb.mxu3 %v3459_v26 }
 0x1fb   : > { %1493 = vmatpush.msrb.mxu3 %v3462_v27 }
 0x1fc   : > { %v1365_v19 = vpop.f32.mrf.mxu2  ;;  %v750_v2 = vpop.f32.mrf.mxu0 }
 0x1fd   : > { %1494 = vmatpush.msrb.mxu3 %v3466_v11  ;;  %v3470_v1 = vadd.f32 %v1365_v19, %v980_v57  ;;  %v981_v9 = vpop.f32.mrf.mxu1 }
 0x204   : > { %v1367_v13 = vpop.f32.mrf.mxu2  ;;  %v753_v15 = vpop.f32.mrf.mxu0 }
 0x205   : > { %v984_v24 = vpop.f32.mrf.mxu1 }
 0x206   : > { %v985_v56 = vadd.f32 %v984_v24, %v753_v15  ;;  %v1519_v15 = vmul.f32 %v3300_v47, %v3300_v47  ;;  %v1518_v24 = vmul.f32 %v3295_v20, %v3295_v20  ;;  %v1514_v47 = vmul.f32 %v3274_v16, %v3274_v16 }
 0x20c   : > { %v1370_v14 = vpop.f32.mrf.mxu2  ;;  %v755_v46 = vpop.f32.mrf.mxu0 }
 0x20d   : > { %v986_v49 = vpop.f32.mrf.mxu1 }
 0x20e   : > { %v987_v60 = vadd.f32 %v986_v49, %v755_v46  ;;  %v1515_v46 = vmul.f32 %v3280_v25, %v3280_v25  ;;  %v1513_v49 = vmul.f32 %v3269_v7, %v3269_v7  ;;  %v1540_v7 = vmul.f32 %v3417_v32, %v3417_v32 }
 0x20f   : > { %v1535_v32 = vmul.f32 %v3389_v48, %v3389_v48 }
 0x214   : > { %v1372_v39 = vpop.f32.mrf.mxu2  ;;  %v758_v10 = vpop.f32.mrf.mxu0 }
 0x215   : > { %v989_v41 = vpop.f32.mrf.mxu1 }
 0x216   : > { %v990_v26 = vadd.f32 %v989_v41, %v758_v10  ;;  %v3793_v41 = vld [vmem:[#allocation15_spill] sm:$0xff] }
 0x21c   : > { %v1375_v3 = vpop.f32.mrf.mxu2  ;;  %v760_v6 = vpop.f32.mrf.mxu0 }
 0x21d   : > { %v991_v17 = vpop.f32.mrf.mxu1  ;;  %v3483_v4 = vadd.f32 %v1375_v3, %v990_v26  ;;  %v1524_v26 = vmul.f32 %v3327_v37, %v3327_v37  ;;  %v1542_v3 = vmul.f32 %v3410_v54, %v3410_v54 }
 0x21e   : > { %v992_v59 = vadd.f32 %v991_v17, %v760_v6  ;;  %v1541_v6 = vmul.f32 %v3414_v31, %v3414_v31  ;;  %v3794_v17 = vperm.slane %v3407_v45, 0 }
 0x224   : > { %v1377_v38 = vpop.f32.mrf.mxu2  ;;  %v763_v22 = vpop.f32.mrf.mxu0 }
 0x225   : > { %v994_v55 = vpop.f32.mrf.mxu1  ;;  %v3480_v43 = vadd.f32 %v1377_v38, %v992_v59  ;;  %v1525_v59 = vmul.f32 %v3324_v36, %v3324_v36  ;;  %v1520_v36 = vmul.f32 %v3344_v52, %v3344_v52  ;;  %v1539_v38 = vmul.f32 %v3420_v23, %v3420_v23 }
 0x226   : > { %v995_v19 = vadd.f32 %v994_v55, %v763_v22  ;;  %v3486_v22 = vadd.f32 %v1372_v39, %v987_v60  ;;  %v1447_v60 = vperm.slane %v3407_v45, 2  ;;  %v1512_v39 = vmul.f32 %v3263_v61, %v3263_v61 }
 0x227   : > { %v1538_v55 = vmul.f32 %v3423_v63, %v3423_v63 }
 0x22c   : > { %v1380_v50 = vpop.f32.mrf.mxu2  ;;  %v765_v33 = vpop.f32.mrf.mxu0 }
 0x22d   : > { %v996_v57 = vpop.f32.mrf.mxu1  ;;  %v3477_v62 = vadd.f32 %v1380_v50, %v995_v19  ;;  %v1537_v50 = vmul.f32 %v3428_v28, %v3428_v28  ;;  %v1533_v19 = vmul.f32 %v3380_v34, %v3380_v34  ;;  %v1532_v28 = vmul.f32 %v3374_v8, %v3374_v8 }
 0x22e   : > { %v997_v53 = vadd.f32 %v996_v57, %v765_v33  ;;  %v1536_v33 = vmul.f32 %v3431_v0, %v3431_v0  ;;  %v1534_v57 = vmul.f32 %v3383_v44, %v3383_v44 }
 0x234   : > { %v1382_v11 = vpop.f32.mrf.mxu2 }
 0x235   : > { %v3475_v27 = vadd.f32 %v1382_v11, %v997_v53  ;;  %v982_v53 = vadd.f32 %v981_v9, %v750_v2  ;;  %v3489_v11 = vadd.f32 %v1370_v14, %v985_v56  ;;  %v1526_v56 = vmul.f32 %v3320_v29, %v3320_v29 }
 0x236   : > { %v1523_v2 = vmul.f32 %v3330_v40, %v3330_v40  ;;  %v1522_v9 = vmul.f32 %v3333_v42, %v3333_v42  ;;  %v1517_v42 = vmul.f32 %v3292_v35, %v3292_v35  ;;  %v1516_v14 = vmul.f32 %v3285_v30, %v3285_v30 }
 0x237   : > { %1495 = vmatpush.msrb.mxu3 %v3475_v27  ;;  %v3492_v10 = vadd.f32 %v1367_v13, %v982_v53  ;;  %v1521_v13 = vmul.f32 %v3340_v51, %v3340_v51  ;;  %v1511_v30 = vmul.f32 %v3793_v41, %v3793_v41  ;;  %v1531_v53 = vmul.f32 %v3369_v18, %v3369_v18 }
 0x239   : > { %1496 = vmatpush.msrb.mxu3 %v3477_v62 }
 0x23b   : > { %1497 = vmatpush.msrb.mxu3 %v3480_v43 }
 0x23d   : > { %1498 = vmatpush.msrb.mxu3 %v3483_v4 }
 0x23f   : > { %1499 = vmatpush.msrb.mxu3 %v3486_v22 }
 0x241   : > { %1500 = vmatpush.msrb.mxu3 %v3489_v11 }
 0x243   : > { %1501 = vmatpush.msrb.mxu3 %v3492_v10 }
 0x245   : > { %1502 = vmatpush.msrb.mxu3 %v3470_v1 }
 0x247   : > { %1503 = vmatpush.msrb.mxu3 %v3454_v5 }
 0x249   : > { %1504 = vmatpush.msrb.mxu3 %v3441_v58 }
 0x24b   : > { %1505 = vmatpush.msrb.mxu3 %v3435_v12 }
 0x24d   : > { %1506 = vmatpush.msrb.mxu3 %v3425_v21 }
 0x24e   : > { %1507 = vmatmul.f32.vlgmr.msrb.gmra.mxu3 %v1447_v60 }
 0x24f   : > { %1559 = vmatpush.msra.mxu3 %v1526_v56  ;;  %v3795_v56 = vld [vmem:[#allocation19_spill] sm:$0xff] }
 0x251   : > { %1560 = vmatpush.msra.mxu3 %v1525_v59  ;;  %v1530_v59 = vmul.f32 %v3795_v56, %v3795_v56 }
 0x253   : > { %1561 = vmatpush.msra.mxu3 %v1524_v26  ;;  %v3796_v26 = vld [vmem:[#allocation18_spill] sm:$0xff] }
 0x254   : > { %v1529_v44 = vmul.f32 %v3796_v26, %v3796_v26 }
 0x255   : > { %1562 = vmatpush.msra.mxu3 %v1523_v2  ;;  %v3797_v2 = vld [vmem:[#allocation17_spill] sm:$0xff] }
 0x257   : > { %1563 = vmatpush.msra.mxu3 %v1522_v9  ;;  %v1528_v9 = vmul.f32 %v3797_v2, %v3797_v2  ;;  %v1627_v2 = vld [vmem:[#allocation7 + $0x40] sm:$0xff] }
 0x259   : > { %1564 = vmatpush.msra.mxu3 %v1521_v13  ;;  %v3798_v13 = vld [vmem:[#allocation16_spill] sm:$0xff] }
 0x25b   : > { %1565 = vmatpush.msra.mxu3 %v1520_v36  ;;  %v1527_v36 = vmul.f32 %v3798_v13, %v3798_v13 }
 0x25d   : > { %1566 = vmatpush.msra.mxu3 %v1519_v15  ;;  %v3799_v15 = vld [vmem:[#allocation20_spill] sm:$0xff] }
 0x25e   : > { %v1558_v18 = vmul.f32 %v3799_v15, %v3799_v15  ;;  %v1622_v15 = vld [vmem:[#allocation7 + $0x18] sm:$0xff] }
 0x25f   : > { %1567 = vmatpush.msra.mxu3 %v1518_v24  ;;  %v3800_v24 = vperm.slane %v3407_v45, 1  ;;  %v1468_v45 = vpop.f32.mrf.mxu3 }
 0x261   : > { %1568 = vmatpush.msra.mxu3 %v1517_v42  ;;  %v3801_v42 = vld [vmem:[#allocation21_spill] sm:$0xff] }
 0x263   : > { %1569 = vmatpush.msra.mxu3 %v1516_v14  ;;  %v1557_v14 = vmul.f32 %v3801_v42, %v3801_v42 }
 0x265   : > { %1570 = vmatpush.msra.mxu3 %v1515_v46  ;;  %v3802_v46 = vld [vmem:[#allocation22_spill] sm:$0xff] }
 0x267   : > { %1571 = vmatpush.msra.mxu3 %v1514_v47  ;;  %v1556_v47 = vmul.f32 %v3802_v46, %v3802_v46 }
 0x269   : > { %1572 = vmatpush.msra.mxu3 %v1513_v49  ;;  %v3803_v49 = vld [vmem:[#allocation23_spill] sm:$0xff] }
 0x26b   : > { %1573 = vmatpush.msra.mxu3 %v1512_v39  ;;  %v1555_v39 = vmul.f32 %v3803_v49, %v3803_v49 }
 0x26d   : > { %1574 = vmatpush.msra.mxu3 %v1511_v30  ;;  %v1554_v30 = vmul.f32 %v3475_v27, %v3475_v27 }
 0x26e   : > { %1575 = vmatmul.f32.vlgmr.msra.gmra.mxu3 %v3794_v17  ;;  %v1551_v17 = vmul.f32 %v3483_v4, %v3483_v4 }
 0x26f   : > { %1579 = vmatpush.msrb.mxu3 %v1542_v3  ;;  %v1553_v3 = vmul.f32 %v3477_v62, %v3477_v62 }
 0x271   : > { %1580 = vmatpush.msrb.mxu3 %v1541_v6  ;;  %v1552_v6 = vmul.f32 %v3480_v43, %v3480_v43  ;;  %v1547_v43 = vmul.f32 %v3470_v1, %v3470_v1 }
 0x273   : > { %1581 = vmatpush.msrb.mxu3 %v1540_v7  ;;  %v1550_v7 = vmul.f32 %v3486_v22, %v3486_v22 }
 0x275   : > { %1582 = vmatpush.msrb.mxu3 %v1539_v38  ;;  %v1549_v38 = vmul.f32 %v3489_v11, %v3489_v11  ;;  %v1544_v11 = vmul.f32 %v3435_v12, %v3435_v12 }
 0x277   : > { %1583 = vmatpush.msrb.mxu3 %v1538_v55  ;;  %v1548_v55 = vmul.f32 %v3492_v10, %v3492_v10 }
 0x279   : > { %1584 = vmatpush.msrb.mxu3 %v1537_v50  ;;  %v1546_v50 = vmul.f32 %v3454_v5, %v3454_v5  ;;  %v1632_v5 = vld [vmem:[#allocation7 + $0x68] sm:$0xff] }
 0x27b   : > { %1585 = vmatpush.msrb.mxu3 %v1536_v33  ;;  %v1545_v33 = vmul.f32 %v3441_v58, %v3441_v58 }
 0x27d   : > { %1586 = vmatpush.msrb.mxu3 %v1535_v32  ;;  %v1543_v32 = vmul.f32 %v3425_v21, %v3425_v21  ;;  %v1626_v21 = vld [vmem:[#allocation7 + $0x38] sm:$0xff] }
 0x27f   : > { %1587 = vmatpush.msrb.mxu3 %v1534_v57  ;;  %v1634_v57 = vld [vmem:[#allocation7 + $0x78] sm:$0xff] }
 0x281   : > { %1588 = vmatpush.msrb.mxu3 %v1533_v19  ;;  %v1633_v19 = vld [vmem:[#allocation7 + $0x70] sm:$0xff] }
 0x283   : > { %1589 = vmatpush.msrb.mxu3 %v1532_v28  ;;  %v1631_v28 = vld [vmem:[#allocation7 + $0x60] sm:$0xff] }
 0x285   : > { %1590 = vmatpush.msrb.mxu3 %v1531_v53  ;;  %v1630_v53 = vld [vmem:[#allocation7 + $0x58] sm:$0xff] }
 0x287   : > { %1591 = vmatpush.msrb.mxu3 %v1530_v59  ;;  %v1629_v59 = vld [vmem:[#allocation7 + $0x50] sm:$0xff] }
 0x289   : > { %1592 = vmatpush.msrb.mxu3 %v1529_v44  ;;  %v1628_v44 = vld [vmem:[#allocation7 + $0x48] sm:$0xff] }
 0x28b   : > { %1593 = vmatpush.msrb.mxu3 %v1528_v9  ;;  %v1625_v9 = vld [vmem:[#allocation7 + $0x30] sm:$0xff] }
 0x28d   : > { %1594 = vmatpush.msrb.mxu3 %v1527_v36  ;;  %v1623_v36 = vld [vmem:[#allocation7 + $0x20] sm:$0xff] }
 0x28e   : > { %1595 = vmatmul.f32.vlgmr.msrb.gmra.mxu3 %v3800_v24  ;;  %v1620_v24 = vld [vmem:[#allocation7 + $0x8] sm:$0xff] }
 0x28f   : > { %1599 = vmatpush.msra.mxu3 %v1558_v18  ;;  %v1621_v18 = vld [vmem:[#allocation7 + $0x10] sm:$0xff] }
 0x291   : > { %1600 = vmatpush.msra.mxu3 %v1557_v14  ;;  %v1488_v14 = vpop.f32.mrf.mxu3 }
 0x292   : > { %v1489_v49 = vadd.f32 %v1488_v14, %v1468_v45  ;;  %v1691_v45 = vld [vmem:[#allocation8] sm:$0x1] }
 0x293   : > { %1601 = vmatpush.msra.mxu3 %v1556_v47  ;;  %v1619_v47 = vld [vmem:[#allocation7] sm:$0xff] }
 0x295   : > { %1602 = vmatpush.msra.mxu3 %v1555_v39 }
 0x297   : > { %1603 = vmatpush.msra.mxu3 %v1554_v30 }
 0x299   : > { %1604 = vmatpush.msra.mxu3 %v1553_v3 }
 0x29b   : > { %1605 = vmatpush.msra.mxu3 %v1552_v6 }
 0x29d   : > { %1606 = vmatpush.msra.mxu3 %v1551_v17 }
 0x29f   : > { %1607 = vmatpush.msra.mxu3 %v1550_v7 }
 0x2a1   : > { %1608 = vmatpush.msra.mxu3 %v1549_v38 }
 0x2a3   : > { %1609 = vmatpush.msra.mxu3 %v1548_v55 }
 0x2a5   : > { %1610 = vmatpush.msra.mxu3 %v1547_v43 }
 0x2a7   : > { %1611 = vmatpush.msra.mxu3 %v1546_v50 }
 0x2a9   : > { %1612 = vmatpush.msra.mxu3 %v1545_v33 }
 0x2ab   : > { %1613 = vmatpush.msra.mxu3 %v1544_v11 }
 0x2ad   : > { %1614 = vmatpush.msra.mxu3 %v1543_v32 }
 0x2ae   : > { %1615 = vmatmul.f32.vlgmr.msra.gmra.mxu3 %v1447_v60  ;;  %v1624_v60 = vld [vmem:[#allocation7 + $0x28] sm:$0xff] }
 0x2af   : > { %1635 = vmatpush.msrb.mxu3 %v1634_v57 }
 0x2b1   : > { %1636 = vmatpush.msrb.mxu3 %v1633_v19 }
 0x2b3   : > { %1637 = vmatpush.msrb.mxu3 %v1632_v5 }
 0x2b5   : > { %1638 = vmatpush.msrb.mxu3 %v1631_v28 }
 0x2b7   : > { %1639 = vmatpush.msrb.mxu3 %v1630_v53 }
 0x2b9   : > { %1640 = vmatpush.msrb.mxu3 %v1629_v59 }
 0x2bb   : > { %1641 = vmatpush.msrb.mxu3 %v1628_v44 }
 0x2bd   : > { %1642 = vmatpush.msrb.mxu3 %v1627_v2 }
 0x2bf   : > { %1643 = vmatpush.msrb.mxu3 %v1626_v21 }
 0x2c1   : > { %1644 = vmatpush.msrb.mxu3 %v1625_v9 }
 0x2c3   : > { %1645 = vmatpush.msrb.mxu3 %v1624_v60 }
 0x2c5   : > { %1646 = vmatpush.msrb.mxu3 %v1623_v36 }
 0x2c7   : > { %1647 = vmatpush.msrb.mxu3 %v1622_v15 }
 0x2c9   : > { %1648 = vmatpush.msrb.mxu3 %v1621_v18 }
 0x2cb   : > { %1649 = vmatpush.msrb.mxu3 %v1620_v24 }
 0x2cd   : > { %1650 = vmatpush.msrb.mxu3 %v1619_v47 }
 0x2cf   : > { %1655 = vmatpush.msra.mxu3 %v1634_v57 }
 0x2d1   : > { %1656 = vmatpush.msra.mxu3 %v1633_v19  ;;  %v1508_v39 = vpop.f32.mrf.mxu3 }
 0x2d2   : > { %v1509_v30 = vadd.f32 %v1508_v39, %v1489_v49 }
 0x2d3   : > { %1657 = vmatpush.msra.mxu3 %v1632_v5 }
 0x2d4   : > { %1651 = vmatmul.f32.vlgmr.msrb.gmra.mxu3 %v1509_v30 }
 0x2d5   : > { %1658 = vmatpush.msra.mxu3 %v1631_v28 }
 0x2d7   : > { %1659 = vmatpush.msra.mxu3 %v1630_v53 }
 0x2d9   : > { %1660 = vmatpush.msra.mxu3 %v1629_v59 }
 0x2db   : > { %1661 = vmatpush.msra.mxu3 %v1628_v44  ;;  %v1689_v44 = vld [vmem:[%s3748_s3] sm:$0x1] }
 0x2dd   : > { %1662 = vmatpush.msra.mxu3 %v1627_v2 }
 0x2df   : > { %1663 = vmatpush.msra.mxu3 %v1626_v21 }
 0x2e1   : > { %1664 = vmatpush.msra.mxu3 %v1625_v9 }
 0x2e3   : > { %1665 = vmatpush.msra.mxu3 %v1624_v60 }
 0x2e5   : > { %1666 = vmatpush.msra.mxu3 %v1623_v36 }
 0x2e7   : > { %1667 = vmatpush.msra.mxu3 %v1622_v15 }
 0x2e9   : > { %1668 = vmatpush.msra.mxu3 %v1621_v18 }
 0x2eb   : > { %1669 = vmatpush.msra.mxu3 %v1620_v24 }
 0x2ed   : > { %1670 = vmatpush.msra.mxu3 %v1619_v47 }
 0x2f1   : > { %v1576_v3 = vpop.f32.mrf.mxu3 }
 0x311   : > { %v1596_v6 = vpop.f32.mrf.mxu3 }
 0x312   : > { %v1597_v17 = vadd.f32 %v1596_v6, %v1576_v3 }
 0x331   : > { %v1616_v7 = vpop.f32.mrf.mxu3 }
 0x332   : > { %v1617_v38 = vadd.f32 %v1616_v7, %v1597_v17 }
 0x334   : > { %1671 = vmatmul.f32.vlgmr.msra.gmra.mxu3 %v1617_v38 }
 0x357   : > { %v1652_v55 = vpop.f32.mrf.mxu3 }
 0x358   : > { %v1675_v43 = vmul.f32 %v1652_v55, %v1652_v55 }
 0x3b7   : > { %v1672_v50 = vpop.f32.mrf.mxu3 }
 0x3b8   : > { %v1676_v33 = vsub.f32 %v1672_v50, %v1675_v43 }
 0x3ba   : > { %v1677_v11 = vmax.f32 %v1676_v33, 0.0 }
 0x3bc   : > { %v1678_v32 = vadd.f32 1e-05, %v1677_v11 }
 0x3be   : > { %2818 = vrsqrt.f32 %v1678_v32  ;;  %vm1685_vm1 = vweird.f32 %v1678_v32 }
 0x3c4   : > { %v2819_v57 = vpop.eup %2818 }
 0x3c5   : > { %v1680_v19 = vmul.f32 %v2819_v57, %v1678_v32  ;;  %vm1686_vm0 = vweird.f32 %v2819_v57 }
 0x3c6   : > { %vm1687_vm2 = vmor %vm1685_vm1, %vm1686_vm0 }
 0x3c7   : > { %v1681_v5 = vmul.f32 %v2819_v57, %v1680_v19 }
 0x3c9   : > { %v1682_v28 = vmul.f32 0.5, %v1681_v5 }
 0x3cb   : > { %v1683_v53 = vsub.f32 1.5, %v1682_v28 }
 0x3cd   : > { %v1684_v59 = vmul.f32 %v2819_v57, %v1683_v53 }
 0x3cf   : > { %v1688_v2 = vsel %vm1687_vm2, %v2819_v57, %v1684_v59 }
 0x3d0   : > { %v1690_v21 = vmul.f32 %v1689_v44, %v1688_v2 }
 0x3d2   : > { %v1692_v9 = vmul.f32 %v1690_v21, %v1652_v55  ;;  %v1694_v60 = vperm.slane %v1690_v21, 0 }
 0x3d4   : > { %v1693_v36 = vsub.f32 %v1691_v45, %v1692_v9  ;;  %v1695_v15 = vmul.f32 %v1694_v60, %v3793_v41  ;;  %v1696_v18 = vmul.f32 %v1694_v60, %v3263_v61  ;;  %v1697_v24 = vmul.f32 %v1694_v60, %v3274_v16 }
 0x3d5   : > { %v1698_v14 = vmul.f32 %v1694_v60, %v3280_v25  ;;  %v1699_v47 = vmul.f32 %v1694_v60, %v3292_v35  ;;  %v1700_v39 = vmul.f32 %v1694_v60, %v3295_v20  ;;  %v1701_v30 = vmul.f32 %v1694_v60, %v3344_v52 }
 0x3d6   : > { %v3614_v49 = vperm.slane %v1693_v36, 0  ;;  %v1702_v3 = vmul.f32 %v1694_v60, %v3340_v51  ;;  %v1703_v6 = vmul.f32 %v1694_v60, %v3330_v40  ;;  %v1704_v41 = vmul.f32 %v1694_v60, %v3327_v37 }
 0x3d7   : > { %v1705_v61 = vmul.f32 %v1694_v60, %v3320_v29  ;;  %v1706_v16 = vmul.f32 %v1694_v60, %v3798_v13  ;;  %v1707_v25 = vmul.f32 %v1694_v60, %v3796_v26  ;;  %v1708_v35 = vmul.f32 %v1694_v60, %v3795_v56 }
 0x3d8   : > { %v1709_v17 = vmul.f32 %v1694_v60, %v3374_v8  ;;  %v1710_v20 = vmul.f32 %v1694_v60, %v3380_v34  ;;  %v1711_v52 = vmul.f32 %v1694_v60, %v3389_v48  ;;  %v1712_v51 = vmul.f32 %v1694_v60, %v3431_v0 }
 0x3d9   : > { %v1713_v40 = vmul.f32 %v1694_v60, %v3423_v63  ;;  %v1714_v37 = vmul.f32 %v1694_v60, %v3420_v23  ;;  %v1715_v29 = vmul.f32 %v1694_v60, %v3414_v31  ;;  %v1716_v13 = vmul.f32 %v1694_v60, %v3410_v54 }
 0x3da   : > { %v1717_v26 = vmul.f32 %v1694_v60, %v3435_v12  ;;  %v1718_v56 = vmul.f32 %v1694_v60, %v3441_v58  ;;  %v1719_v8 = vmul.f32 %v1694_v60, %v3470_v1  ;;  %v1720_v34 = vmul.f32 %v1694_v60, %v3492_v10 }
 0x3db   : > { %v1721_v48 = vmul.f32 %v1694_v60, %v3486_v22  ;;  %v1722_v0 = vmul.f32 %v1694_v60, %v3483_v4  ;;  %v1723_v63 = vmul.f32 %v1694_v60, %v3477_v62  ;;  %v1724_v23 = vmul.f32 %v1694_v60, %v3475_v27 }
 0x3dc   : > { %v1725_v31 = vmul.f32 %v1694_v60, %v3802_v46  ;;  %v3643_v54 = vmul.f32 %v1694_v60, %v3801_v42  ;;  %v1730_v12 = vadd.f32 %v3614_v49, %v1695_v15  ;;  %v1731_v58 = vadd.f32 %v3614_v49, %v1696_v18 }
 0x3dd   : > { %v1732_v1 = vadd.f32 %v3614_v49, %v1697_v24  ;;  %v1733_v10 = vadd.f32 %v3614_v49, %v1698_v14  ;;  %v1734_v22 = vadd.f32 %v3614_v49, %v1699_v47  ;;  %v1735_v4 = vadd.f32 %v3614_v49, %v1700_v39 }
 0x3de   : > { %v1736_v62 = vadd.f32 %v3614_v49, %v1701_v30  ;;  %v1737_v27 = vadd.f32 %v3614_v49, %v1702_v3  ;;  %v1738_v46 = vadd.f32 %v3614_v49, %v1703_v6  ;;  %v1739_v42 = vadd.f32 %v3614_v49, %v1704_v41 }
 0x3df   : > { %v1740_v7 = vadd.f32 %v3614_v49, %v1705_v61  ;;  %v1741_v38 = vadd.f32 %v3614_v49, %v1706_v16  ;;  %v1742_v55 = vadd.f32 %v3614_v49, %v1707_v25  ;;  %v1743_v43 = vadd.f32 %v3614_v49, %v1708_v35 }
 0x3e0   : > { %v1744_v50 = vadd.f32 %v3614_v49, %v1709_v17  ;;  %v1745_v33 = vadd.f32 %v3614_v49, %v1710_v20  ;;  %v1746_v11 = vadd.f32 %v3614_v49, %v1711_v52  ;;  %v1747_v32 = vadd.f32 %v3614_v49, %v1712_v51 }
 0x3e1   : > { %v1748_v57 = vadd.f32 %v3614_v49, %v1713_v40  ;;  %v1749_v19 = vadd.f32 %v3614_v49, %v1714_v37  ;;  %v3666_v5 = vadd.f32 %v3614_v49, %v1715_v29  ;;  %v1751_v28 = vadd.f32 %v3614_v49, %v1716_v13 }
 0x3e2   : > { %v3670_v53 = vadd.f32 %v3614_v49, %v1717_v26  ;;  %v3673_v59 = vadd.f32 %v3614_v49, %v1718_v56  ;;  %v1762_v44 = vmax.f32 %v1730_v12, 0.0  ;;  %v1763_v2 = vmax.f32 %v1731_v58, 0.0 }
 0x3e3   : > { %v1764_v21 = vmax.f32 %v1732_v1, 0.0  ;;  %v1765_v9 = vmax.f32 %v1733_v10, 0.0  ;;  %v1766_v45 = vmax.f32 %v1734_v22, 0.0  ;;  %v1767_v60 = vmax.f32 %v1735_v4, 0.0 }
 0x3e4   : > { %v1768_v36 = vmax.f32 %v1736_v62, 0.0  ;;  %v1769_v15 = vmax.f32 %v1737_v27, 0.0  ;;  %v1754_v18 = vadd.f32 %v3614_v49, %v1719_v8  ;;  %v1755_v24 = vadd.f32 %v3614_v49, %v1720_v34 }
 0x3e5   : > { %v1770_v14 = vmax.f32 %v1738_v46, 0.0  ;;  %v1771_v47 = vmax.f32 %v1739_v42, 0.0  ;;  %v1756_v39 = vadd.f32 %v3614_v49, %v1721_v48  ;;  %v1757_v30 = vadd.f32 %v3614_v49, %v1722_v0 }
 0x3e6   : > { %v1772_v3 = vmax.f32 %v1740_v7, 0.0  ;;  %v1773_v6 = vmax.f32 %v1741_v38, 0.0  ;;  %v1774_v41 = vmax.f32 %v1742_v55, 0.0  ;;  %v1775_v61 = vmax.f32 %v1743_v43, 0.0 }
 0x3e7   : > { %v2416_v16 = vpack.c.bf16 %v1763_v2, %v1762_v44  ;;  %v2421_v25 = vpack.c.bf16 %v1765_v9, %v1764_v21  ;;  %v1776_v35 = vmax.f32 %v1744_v50, 0.0  ;;  %v1777_v17 = vmax.f32 %v1745_v33, 0.0 }
 0x3e8   : > { %v2426_v20 = vpack.c.bf16 %v1767_v60, %v1766_v45  ;;  %v2431_v52 = vpack.c.bf16 %v1769_v15, %v1768_v36  ;;  %v1758_v51 = vadd.f32 %v3614_v49, %v1723_v63  ;;  %v1778_v40 = vmax.f32 %v1746_v11, 0.0 }
 0x3e9   : > { %v1779_v37 = vmax.f32 %v1747_v32, 0.0  ;;  %2417 = vst [vmem:[%s3681_s20] sm:$0xff] %v2416_v16   ;;  %v2436_v29 = vpack.c.bf16 %v1771_v47, %v1770_v14  ;;  %v1759_v13 = vadd.f32 %v3614_v49, %v1724_v23  ;;  %v1780_v26 = vmax.f32 %v1748_v57, 0.0 }
 0x3ea   : > { %v1781_v56 = vmax.f32 %v1749_v19, 0.0  ;;  %2516 = vst [vmem:[%s3681_s20 + $0x8] sm:$0xff] %v2421_v25   ;;  %v2441_v8 = vpack.c.bf16 %v1773_v6, %v1772_v3  ;;  %v1760_v34 = vadd.f32 %v3614_v49, %v1725_v31  ;;  %v1782_v48 = vmax.f32 %v3666_v5, 0.0 }
 0x3eb   : > { %v1783_v0 = vmax.f32 %v1751_v28, 0.0  ;;  %2517 = vst [vmem:[%s3681_s20 + $0x10] sm:$0xff] %v2426_v20   ;;  %v2446_v63 = vpack.c.bf16 %v1775_v61, %v1774_v41  ;;  %v1761_v12 = vadd.f32 %v3614_v49, %v3643_v54  ;;  %v1784_v58 = vmax.f32 %v3670_v53, 0.0 }
 0x3ec   : > { %v1785_v23 = vmax.f32 %v3673_v59, 0.0  ;;  %2518 = vst [vmem:[%s3681_s20 + $0x18] sm:$0xff] %v2431_v52   ;;  %v2451_v1 = vpack.c.bf16 %v1777_v17, %v1776_v35  ;;  %v1786_v10 = vmax.f32 %v1754_v18, 0.0  ;;  %v1787_v31 = vmax.f32 %v1755_v24, 0.0 }
 0x3ed   : > { %2519 = vst [vmem:[%s3681_s20 + $0x20] sm:$0xff] %v2436_v29   ;;  %v2456_v22 = vpack.c.bf16 %v1779_v37, %v1778_v40  ;;  %v1788_v4 = vmax.f32 %v1756_v39, 0.0  ;;  %v1789_v62 = vmax.f32 %v1757_v30, 0.0  ;;  %v2461_v49 = vpack.c.bf16 %v1781_v56, %v1780_v26 }
 0x3ee   : > { %2520 = vst [vmem:[%s3681_s20 + $0x28] sm:$0xff] %v2441_v8   ;;  %v1790_v54 = vmax.f32 %v1758_v51, 0.0  ;;  %v1791_v27 = vmax.f32 %v1759_v13, 0.0  ;;  %v2466_v46 = vpack.c.bf16 %v1783_v0, %v1782_v48  ;;  %v1792_v42 = vmax.f32 %v1760_v34, 0.0 }
 0x3ef   : > { %2521 = vst [vmem:[%s3681_s20 + $0x30] sm:$0xff] %v2446_v63   ;;  %v1793_v7 = vmax.f32 %v1761_v12, 0.0  ;;  %v2471_v38 = vpack.c.bf16 %v1785_v23, %v1784_v58  ;;  %v2476_v55 = vpack.c.bf16 %v1787_v31, %v1786_v10  ;;  %v2481_v43 = vpack.c.bf16 %v1789_v62, %v1788_v4 }
 0x3f0   : > { %2522 = vst [vmem:[%s3681_s20 + $0x38] sm:$0xff] %v2451_v1   ;;  %v2486_v50 = vpack.c.bf16 %v1791_v27, %v1790_v54 }
 0x3f1   : > { %2523 = vst [vmem:[%s3681_s20 + $0x40] sm:$0xff] %v2456_v22   ;;  %v2491_v33 = vpack.c.bf16 %v1793_v7, %v1792_v42 }
 0x3f2   : > { %2524 = vst [vmem:[%s3681_s20 + $0x48] sm:$0xff] %v2461_v49  }
 0x3f3   : > { %2525 = vst [vmem:[%s3681_s20 + $0x50] sm:$0xff] %v2466_v46  }
 0x3f4   : > { %2526 = vst [vmem:[%s3681_s20 + $0x58] sm:$0xff] %v2471_v38  }
 0x3f5   : > { %2527 = vst [vmem:[%s3681_s20 + $0x60] sm:$0xff] %v2476_v55  }
 0x3f6   : > { %2528 = vst [vmem:[%s3681_s20 + $0x68] sm:$0xff] %v2481_v43  }
 0x3f7   : > { %2529 = vst [vmem:[%s3681_s20 + $0x70] sm:$0xff] %v2486_v50  }
 0x3f8   : > { %2530 = vst [vmem:[%s3681_s20 + $0x78] sm:$0xff] %v2491_v33  }
 0x3f9   : > { %2967 = shalt.err (!%p2964_p0)
}
 0x3fa   : > { %s3039_s11 = smov 64   ;;  %s3040_s12 = smov 4  }
 0x3fb   : > { %2733 = dma.vmem_to_hbm [thread:$0]  (%p3168_p3), %s1888_s30, 2048, %s1890_s13, %s1874_s16, %s3039_s11, %s3039_s11, %s3040_s12  }
 0x3fc PF: > { %s1904_s19 = sand.u32 1, %s3010_s21   ;;  %p2750_p5 = pnand %p2028_p11, %p3125_p6 }
 0x3fd   : > { %s1905_s20 = scalar_lea.sflag [#allocation4], %s1904_s19 }
 0x3fe   : > { %p2751_p7 = pneg %p2750_p5 }
 0x400   : > { %3005 = dma.done.wait (%p2751_p7), %s1905_s20, 2048  }
 0x401   : > { %3007 = vsyncadd (%p2751_p7), %s1905_s20, 4294965248  ;;  %s24_s26 = sadd.s32 1, %s3030_s26   ;;  %s3804_s21 = smov %s3014_s22 }
 0x402   : > { %p21_p9 = scmp.ge.s32.totalorder %s24_s26, 4   ;;  %s3805_s22 = smov %s3018_s23 }
 0x403   : > { %s3806_s23 = smov %s3180_s28  ;;  %s3807_s24 = smov %s3026_s25 }
 0x404   : > { %s3808_s25 = smov %s3810_s14  ;;  %23 = sbr.rel (!%p21_p9) target bundleno = 12 (0xc), region = 124 }
 0x409   :  { %1911 = vsyncpa [#allocation3], 1 }
 0x40a   :  { %1913 = vsyncpa [#allocation3 + $0x1], 1 }
 0x40b   :  { %1914 = vsyncpa [#allocation6], 1 }
 0x40c   :  { %1915 = vsyncpa [#allocation9], 1 }
 0x40d   :  { %1916 = vsyncpa [#allocation4], 1 }
 0x40e   :  { %1918 = vsyncpa [#allocation4 + $0x1], 1 }

</bundles_post_ra>
